<compile_context>
chip_gen: v7x
topology: tpu7x:2x2x1
jax: 0.10.0
libtpu: 0.0.40
codegen_flags: <defaults>
</compile_context>

<pallas_src>
import functools
import math

import jax
import jax.numpy as jnp
from jax import lax
from jax.experimental import pallas as pl
from jax.experimental.pallas import tpu as pltpu

_BF16 = jnp.bfloat16
_NEG_BIG = jnp.float32(-1e30)       # finite "-inf" (diagonal is never masked)
_VMEM_FLOOR = 32 * 1024 * 1024
_VMEM_CAP = 64 * 1024 * 1024


def _row_tile(m):
    """MXU-friendly row tile; prefer >=2 grid steps so both v7x TCs engage."""
    if m % 2 == 0:
        for t in (512, 256, 128, 64, 32, 16, 8):
            if t <= m // 2 and m % t == 0:
                return t
    for t in (512, 256, 128, 64, 32, 16, 8):
        if m % t == 0:
            return t
    return m


def _vmem_limit(arrays):
    nbytes = sum(int(a.size) * a.dtype.itemsize for a in arrays)
    return int(min(max(3 * nbytes, _VMEM_FLOOR), _VMEM_CAP))


# ----------------------------- Pallas kernels -----------------------------

def _layer_kernel(h_ref, lnp_ref, wqkv_ref, bqkv_ref, seg_ref, qkg_ref, qkb_ref,
                  mask_ref, wo_ref, bo_ref, w1_ref, b1_ref, w2_ref, b2_ref,
                  o_ref, *, eps, scale, num_q_heads, num_kv_heads, head_dim):
    S = h_ref.shape[1]
    nq = num_q_heads * head_dim
    nk = num_kv_heads * head_dim
    rep = num_q_heads // num_kv_heads

    h = h_ref[0]                                   # (S, H) f32
    lnp = lnp_ref[...]                             # (4, H): attn_g, attn_b, ffn_g, ffn_b

    # ---- LN1 (f32 statistics) ----
    mean = jnp.mean(h, axis=-1, keepdims=True)
    xc = h - mean
    var = jnp.mean(xc * xc, axis=-1, keepdims=True)
    ln1 = (xc * lax.rsqrt(var + eps) * lnp[0:1] + lnp[1:2]).astype(_BF16)

    # ---- packed Q|K|V projection: one bf16 matmul, f32 accumulation ----
    qkv = jnp.dot(ln1, wqkv_ref[...], preferred_element_type=jnp.float32) + bqkv_ref[...]
    qk = qkv[:, :nq + nk]                          # (S, nq+nk) f32
    v = qkv[:, nq + nk:].astype(_BF16)             # (S, nk)

    # ---- per-head q/k LayerNorm via precomputed block-diagonal seg matrix ----
    seg = seg_ref[...]                             # (nq+nk, nq+nk) f32, 1/head_dim blocks
    m = jnp.dot(qk, seg, preferred_element_type=jnp.float32)        # per-head mean
    tc = qk - m
    vv = jnp.dot(tc * tc, seg, preferred_element_type=jnp.float32)  # per-head variance
    qkn = tc * lax.rsqrt(vv + eps) * qkg_ref[...] + qkb_ref[...]
    q = qkn[:, :nq].astype(_BF16)
    k = qkn[:, nq:].astype(_BF16)

    # ---- causal attention, GQA-grouped: rep query heads stacked per KV head ----
    mask = mask_ref[...]                           # (rep*S, S) additive f32, precomputed
    ctx_heads = []
    for g in range(num_kv_heads):                  # static unroll over KV heads
        kg = k[:, g * head_dim:(g + 1) * head_dim]                 # (S, D)
        vg = v[:, g * head_dim:(g + 1) * head_dim]                 # (S, D)
        qg = jnp.concatenate(
            [q[:, (g * rep + r) * head_dim:(g * rep + r + 1) * head_dim]
             for r in range(rep)], axis=0)                         # (rep*S, D)
        s = lax.dot_general(qg, kg, (((1,), (1,)), ((), ())),
                            preferred_element_type=jnp.float32) * scale + mask
        mx = jnp.max(s, axis=-1, keepdims=True)
        p = jnp.exp(s - mx)
        denom = jnp.sum(p, axis=-1, keepdims=True)
        p = p * pl.reciprocal(denom, approx=True)                  # EUP slot
        ctxg = jnp.dot(p.astype(_BF16), vg, preferred_element_type=jnp.float32)
        for r in range(rep):
            ctx_heads.append(ctxg[r * S:(r + 1) * S, :])           # head g*rep + r
    ctx = jnp.concatenate(ctx_heads, axis=-1).astype(_BF16)        # (S, nq) head-major

    # ---- single concatenated output projection + residual ----
    h1 = h + jnp.dot(ctx, wo_ref[...], preferred_element_type=jnp.float32) + bo_ref[...]

    # ---- LN2 + FFN (exact erf GELU) + residual ----
    mean2 = jnp.mean(h1, axis=-1, keepdims=True)
    xc2 = h1 - mean2
    var2 = jnp.mean(xc2 * xc2, axis=-1, keepdims=True)
    ln2 = (xc2 * lax.rsqrt(var2 + eps) * lnp[2:3] + lnp[3:4]).astype(_BF16)
    mid = jnp.dot(ln2, w1_ref[...], preferred_element_type=jnp.float32) + b1_ref[...]
    mid = 0.5 * mid * (1.0 + lax.erf(mid * (1.0 / math.sqrt(2.0))))
    out = jnp.dot(mid.astype(_BF16), w2_ref[...], preferred_element_type=jnp.float32) + b2_ref[...]
    o_ref[0] = h1 + out


def _final_kernel(h_ref, lnf_ref, w_ref, o_ref, *, eps):
    h = h_ref[...]
    lnf = lnf_ref[...]                             # (2, H): gamma, beta
    mean = jnp.mean(h, axis=-1, keepdims=True)
    xc = h - mean
    var = jnp.mean(xc * xc, axis=-1, keepdims=True)
    ln = xc * lax.rsqrt(var + eps) * lnf[0:1] + lnf[1:2]
    # output Linear has no bias
    o_ref[...] = jnp.dot(ln.astype(_BF16), w_ref[...], preferred_element_type=jnp.float32)


# ----------------------------- pallas_call wrappers -----------------------------

def layer_block(h, lyr, seg, mask, num_q_heads, num_kv_heads, head_dim, eps, scale):
    B, S, H = h.shape
    nq, nk = num_q_heads * head_dim, num_kv_heads * head_dim
    rep = num_q_heads // num_kv_heads
    const = lambda b: (0, 0)
    args = (h, lyr["lnp"], lyr["wqkv"], lyr["bqkv"], seg, lyr["qkg"], lyr["qkb"],
            mask, lyr["wo"], lyr["bo"], lyr["w1"], lyr["b1"], lyr["w2"], lyr["b2"])
    return pl.pallas_call(
        functools.partial(_layer_kernel, eps=eps, scale=scale,
                          num_q_heads=num_q_heads, num_kv_heads=num_kv_heads,
                          head_dim=head_dim),
        out_shape=jax.ShapeDtypeStruct((B, S, H), jnp.float32),
        grid=(B,),
        in_specs=[
            pl.BlockSpec((1, S, H), lambda b: (b, 0, 0)),        # h
            pl.BlockSpec((4, H), const),                         # packed LN params
            pl.BlockSpec((H, nq + 2 * nk), const),               # packed Wq|Wk|Wv (bf16)
            pl.BlockSpec((1, nq + 2 * nk), const),               # packed bq|bk|bv
            pl.BlockSpec((nq + nk, nq + nk), const),             # seg (block-diag 1/D)
            pl.BlockSpec((1, nq + nk), const),                   # tiled qk-norm gamma
            pl.BlockSpec((1, nq + nk), const),                   # tiled qk-norm beta
            pl.BlockSpec((rep * S, S), const),                   # additive causal mask
            pl.BlockSpec((nq, H), const),                        # Wo (bf16)
            pl.BlockSpec((1, H), const),                         # bo
            pl.BlockSpec((H, 4 * H), const),                     # W1 (bf16)
            pl.BlockSpec((1, 4 * H), const),                     # b1
            pl.BlockSpec((4 * H, H), const),                     # W2 (bf16)
            pl.BlockSpec((1, H), const),                         # b2
        ],
        out_specs=pl.BlockSpec((1, S, H), lambda b: (b, 0, 0)),
        compiler_params=pltpu.CompilerParams(
            dimension_semantics=("parallel",),
            vmem_limit_bytes=_vmem_limit(args)),
    )(*args)


def final_logits(h2d, lnf, w_out, eps):
    M, H = h2d.shape
    V = w_out.shape[1]
    tm = _row_tile(M)
    args = (h2d, lnf, w_out)
    return pl.pallas_call(
        functools.partial(_final_kernel, eps=eps),
        out_shape=jax.ShapeDtypeStruct((M, V), jnp.float32),
        grid=(M // tm,),
        in_specs=[
            pl.BlockSpec((tm, H), lambda i: (i, 0)),
            pl.BlockSpec((2, H), lambda i: (0, 0)),
            pl.BlockSpec((H, V), lambda i: (0, 0)),
        ],
        out_specs=pl.BlockSpec((tm, V), lambda i: (i, 0)),
        compiler_params=pltpu.CompilerParams(
            dimension_semantics=("parallel",),
            vmem_limit_bytes=_vmem_limit(args)),
    )(h2d, lnf, w_out)


# ----------------------------- parameters -----------------------------

def init_params(key, cfg):
    """Torch-layout-equivalent f32 parameters (used by the pure-JAX reference)."""
    V, H, L = cfg["vocab_size"], cfg["hidden_size"], cfg["num_layers"]
    Hq, Hkv = cfg["num_query_heads"], cfg["num_key_value_heads"]
    D = H // Hq

    def normal(k, shape):
        return 0.02 * jax.random.normal(k, shape, dtype=jnp.float32)

    keys = iter(jax.random.split(key, 8 * L + 4))
    params = {"embed": normal(next(keys), (V, H)), "layers": []}
    for _ in range(L):
        params["layers"].append({
            "attn_norm_g": jnp.ones((H,), jnp.float32),
            "attn_norm_b": jnp.zeros((H,), jnp.float32),
            "wq": normal(next(keys), (H, Hq * D)), "bq": jnp.zeros((Hq * D,), jnp.float32),
            "wk": normal(next(keys), (H, Hkv * D)), "bk": jnp.zeros((Hkv * D,), jnp.float32),
            "wv": normal(next(keys), (H, Hkv * D)), "bv": jnp.zeros((Hkv * D,), jnp.float32),
            "wo": normal(next(keys), (Hq * D, H)), "bo": jnp.zeros((H,), jnp.float32),
            "qn_g": jnp.ones((D,), jnp.float32), "qn_b": jnp.zeros((D,), jnp.float32),
            "kn_g": jnp.ones((D,), jnp.float32), "kn_b": jnp.zeros((D,), jnp.float32),
            "ffn_norm_g": jnp.ones((H,), jnp.float32),
            "ffn_norm_b": jnp.zeros((H,), jnp.float32),
            "w1": normal(next(keys), (H, 4 * H)), "b1": jnp.zeros((4 * H,), jnp.float32),
            "w2": normal(next(keys), (4 * H, H)), "b2": jnp.zeros((H,), jnp.float32),
        })
    params["final_norm_g"] = jnp.ones((H,), jnp.float32)
    params["final_norm_b"] = jnp.zeros((H,), jnp.float32)
    params["w_out"] = normal(next(keys), (H, V))   # output Linear has no bias
    return params


def prepare_params(params, cfg):
    """One-time packing / bf16 casting for the Pallas kernels (hoisted out of forward)."""
    H = cfg["hidden_size"]
    Hq, Hkv = cfg["num_query_heads"], cfg["num_key_value_heads"]
    D = H // Hq
    nq, nk = Hq * D, Hkv * D
    kp = {"embed": params["embed"], "layers": []}
    for lyr in params["layers"]:
        kp["layers"].append({
            "lnp": jnp.stack([lyr["attn_norm_g"], lyr["attn_norm_b"],
                              lyr["ffn_norm_g"], lyr["ffn_norm_b"]], axis=0),
            "wqkv": jnp.concatenate([lyr["wq"], lyr["wk"], lyr["wv"]],
                                    axis=1).astype(_BF16),
            "bqkv": jnp.concatenate([lyr["bq"], lyr["bk"], lyr["bv"]]).reshape(1, nq + 2 * nk),
            "qkg": jnp.concatenate([jnp.tile(lyr["qn_g"], Hq),
                                    jnp.tile(lyr["kn_g"], Hkv)]).reshape(1, nq + nk),
            "qkb": jnp.concatenate([jnp.tile(lyr["qn_b"], Hq),
                                    jnp.tile(lyr["kn_b"], Hkv)]).reshape(1, nq + nk),
            "wo": lyr["wo"].astype(_BF16),
            "bo": lyr["bo"].reshape(1, H),
            "w1": lyr["w1"].astype(_BF16), "b1": lyr["b1"].reshape(1, 4 * H),
            "w2": lyr["w2"].astype(_BF16), "b2": lyr["b2"].reshape(1, H),
        })
    kp["lnf"] = jnp.stack([params["final_norm_g"], params["final_norm_b"]], axis=0)
    kp["w_out"] = params["w_out"].astype(_BF16)
    return kp


# ----------------------------- forward (Pallas) -----------------------------

def forward(kparams, input_ids, cfg):
    B, S = input_ids.shape
    H, Hq, Hkv = cfg["hidden_size"], cfg["num_query_heads"], cfg["num_key_value_heads"]
    D = H // Hq
    nq, nk = Hq * D, Hkv * D
    rep = Hq // Hkv
    eps = cfg["layer_norm_eps"]
    scale = D ** (-0.5)

    # glue: embedding gather (table lookup)
    h = kparams["embed"][input_ids]                              # (B, S, H) f32

    # Hoisted constants (built once per forward; constant-folded under jit):
    # additive causal mask, tiled for the rep stacked query heads per KV group.
    causal = jnp.tril(jnp.ones((S, S), dtype=bool))
    mask = jnp.tile(jnp.where(causal, jnp.float32(0.0), _NEG_BIG), (rep, 1))
    # block-diagonal segmented-mean matrix for the fused per-head q/k LayerNorm.
    idx = jnp.arange(nq + nk) // D
    seg = (idx[:, None] == idx[None, :]).astype(jnp.float32) * jnp.float32(1.0 / D)

    for lyr in kparams["layers"]:
        h = layer_block(h, lyr, seg, mask, Hq, Hkv, D, eps, scale)

    logits = final_logits(h.reshape(B * S, H), kparams["lnf"], kparams["w_out"], eps)
    return logits.reshape(B, S, kparams["w_out"].shape[1])


# ----------------------------- pure-JAX reference -----------------------------

def _ln_ref(x, g, b, eps):
    mean = jnp.mean(x, axis=-1, keepdims=True)
    var = jnp.mean((x - mean) ** 2, axis=-1, keepdims=True)
    return (x - mean) * lax.rsqrt(var + eps) * g + b


def _gelu_ref(x):
    return 0.5 * x * (1.0 + lax.erf(x / math.sqrt(2.0)))


def reference_forward(params, input_ids, cfg):
    B, S = input_ids.shape
    H, Hq, Hkv = cfg["hidden_size"], cfg["num_query_heads"], cfg["num_key_value_heads"]
    D = H // Hq
    eps = cfg["layer_norm_eps"]
    scale = D ** (-0.5)
    h = params["embed"][input_ids]
    mask = jnp.where(jnp.triu(jnp.ones((S, S), dtype=bool), k=1),
                     jnp.float32(-jnp.inf), jnp.float32(0.0))
    for lyr in params["layers"]:
        x = _ln_ref(h, lyr["attn_norm_g"], lyr["attn_norm_b"], eps)
        q = x @ lyr["wq"] + lyr["bq"]
        k = x @ lyr["wk"] + lyr["bk"]
        v = x @ lyr["wv"] + lyr["bv"]
        q = _ln_ref(q.reshape(B, S, Hq, D), lyr["qn_g"], lyr["qn_b"], eps)
        k = _ln_ref(k.reshape(B, S, Hkv, D), lyr["kn_g"], lyr["kn_b"], eps)
        v = v.reshape(B, S, Hkv, D)
        rep = Hq // Hkv
        k = jnp.repeat(k, rep, axis=2)
        v = jnp.repeat(v, rep, axis=2)
        qh, kh, vh = (t.transpose(0, 2, 1, 3) for t in (q, k, v))
        s = jnp.einsum("bhqd,bhkd->bhqk", qh, kh) * scale + mask
        p = jax.nn.softmax(s, axis=-1)
        o = jnp.einsum("bhqk,bhkd->bhqd", p, vh)
        o = o.transpose(0, 2, 1, 3).reshape(B, S, Hq * D)
        h = h + (o @ lyr["wo"] + lyr["bo"])
        x = _ln_ref(h, lyr["ffn_norm_g"], lyr["ffn_norm_b"], eps)
        h = h + (_gelu_ref(x @ lyr["w1"] + lyr["b1"]) @ lyr["w2"] + lyr["b2"])
    h = _ln_ref(h, params["final_norm_g"], params["final_norm_b"], eps)
    return h @ params["w_out"]


# ----------------------------- main -----------------------------

if __name__ == "__main__":
    cfg = dict(
        vocab_size=256,
        hidden_size=64,
        num_layers=2,
        num_key_value_heads=2,
        num_query_heads=8,
        layer_norm_eps=1e-5,
    )
    key = jax.random.PRNGKey(0)
    pkey, dkey = jax.random.split(key)
    params = init_params(pkey, cfg)
    kparams = prepare_params(params, cfg)          # one-time packing / bf16 cast

    B, S = 2, 8
    input_ids = jax.random.randint(dkey, (B, S), 0, cfg["vocab_size"], dtype=jnp.int32)

    fwd = jax.jit(functools.partial(forward, cfg=cfg))
    logits = jax.block_until_ready(fwd(kparams, input_ids))

    ref = reference_forward(params, input_ids, cfg)

    assert logits.shape == (B, S, cfg["vocab_size"])
    assert bool(jnp.all(jnp.isfinite(logits)))
    # bf16 matmul operands with f32 accumulation vs fp32 reference
    assert float(jnp.max(jnp.abs(logits - ref))) < 2e-2

    print("KERNEL_OK")
</pallas_src>

<mosaic_0001>
module attributes {stable_mosaic.version = 11 : i64} {
  func.func @_layer_kernel(%arg0: i32, %arg1: memref<1x8x64xf32, #tpu.memory_space<vmem>>, %arg2: memref<4x64xf32, #tpu.memory_space<vmem>>, %arg3: memref<64x96xbf16, #tpu.memory_space<vmem>>, %arg4: memref<1x96xf32, #tpu.memory_space<vmem>>, %arg5: memref<80x80xf32, #tpu.memory_space<vmem>>, %arg6: memref<1x80xf32, #tpu.memory_space<vmem>>, %arg7: memref<1x80xf32, #tpu.memory_space<vmem>>, %arg8: memref<32x8xf32, #tpu.memory_space<vmem>>, %arg9: memref<64x64xbf16, #tpu.memory_space<vmem>>, %arg10: memref<1x64xf32, #tpu.memory_space<vmem>>, %arg11: memref<64x256xbf16, #tpu.memory_space<vmem>>, %arg12: memref<1x256xf32, #tpu.memory_space<vmem>>, %arg13: memref<256x64xbf16, #tpu.memory_space<vmem>>, %arg14: memref<1x64xf32, #tpu.memory_space<vmem>>, %arg15: memref<1x8x64xf32, #tpu.memory_space<vmem>>) attributes {dimension_semantics = [#tpu.dimension_semantics<parallel>], iteration_bounds = array<i64: 2>, scalar_prefetch = 0 : i64, scratch_operands = 0 : i64, tpu.core_type = #tpu.core_type<tc>, window_params = [{transform_indices = @transform_0, window_bounds = array<i64: 1, 8, 64>}, {pipeline_mode = #tpu.pipeline_mode<synchronous>, transform_indices = @transform_1, window_bounds = array<i64: 4, 64>}, {pipeline_mode = #tpu.pipeline_mode<synchronous>, transform_indices = @transform_2, window_bounds = array<i64: 64, 96>}, {pipeline_mode = #tpu.pipeline_mode<synchronous>, transform_indices = @transform_3, window_bounds = array<i64: 1, 96>}, {pipeline_mode = #tpu.pipeline_mode<synchronous>, transform_indices = @transform_4, window_bounds = array<i64: 80, 80>}, {pipeline_mode = #tpu.pipeline_mode<synchronous>, transform_indices = @transform_5, window_bounds = array<i64: 1, 80>}, {pipeline_mode = #tpu.pipeline_mode<synchronous>, transform_indices = @transform_6, window_bounds = array<i64: 1, 80>}, {pipeline_mode = #tpu.pipeline_mode<synchronous>, transform_indices = @transform_7, window_bounds = array<i64: 32, 8>}, {pipeline_mode = #tpu.pipeline_mode<synchronous>, transform_indices = @transform_8, window_bounds = array<i64: 64, 64>}, {pipeline_mode = #tpu.pipeline_mode<synchronous>, transform_indices = @transform_9, window_bounds = array<i64: 1, 64>}, {pipeline_mode = #tpu.pipeline_mode<synchronous>, transform_indices = @transform_10, window_bounds = array<i64: 64, 256>}, {pipeline_mode = #tpu.pipeline_mode<synchronous>, transform_indices = @transform_11, window_bounds = array<i64: 1, 256>}, {pipeline_mode = #tpu.pipeline_mode<synchronous>, transform_indices = @transform_12, window_bounds = array<i64: 256, 64>}, {pipeline_mode = #tpu.pipeline_mode<synchronous>, transform_indices = @transform_13, window_bounds = array<i64: 1, 64>}, {transform_indices = @transform_14, window_bounds = array<i64: 1, 8, 64>}]} {
    %c0 = arith.constant 0 : index
    %c0_0 = arith.constant 0 : index
    %c0_1 = arith.constant 0 : index
    %0 = vector.load %arg1[%c0, %c0_0, %c0_1] : memref<1x8x64xf32, #tpu.memory_space<vmem>>, vector<1x8x64xf32>
    %1 = vector.shape_cast %0 : vector<1x8x64xf32> to vector<8x64xf32>
    %c0_2 = arith.constant 0 : index
    %c0_3 = arith.constant 0 : index
    %2 = vector.load %arg2[%c0_2, %c0_3] : memref<4x64xf32, #tpu.memory_space<vmem>>, vector<4x64xf32>
    %cst = arith.constant dense<0.000000e+00> : vector<8xf32>
    %3 = vector.multi_reduction <add>, %1, %cst [1] : vector<8x64xf32> to vector<8xf32>
    %4 = vector.shape_cast %3 : vector<8xf32> to vector<8x1xf32>
    %cst_4 = arith.constant 6.400000e+01 : f32
    %5 = vector.broadcast %cst_4 : f32 to vector<8x1xf32>
    %6 = arith.divf %4, %5 : vector<8x1xf32>
    %7 = vector.broadcast %6 : vector<8x1xf32> to vector<8x64xf32>
    %8 = arith.subf %1, %7 : vector<8x64xf32>
    %9 = arith.mulf %8, %8 : vector<8x64xf32>
    %cst_5 = arith.constant dense<0.000000e+00> : vector<8xf32>
    %10 = vector.multi_reduction <add>, %9, %cst_5 [1] : vector<8x64xf32> to vector<8xf32>
    %11 = vector.shape_cast %10 : vector<8xf32> to vector<8x1xf32>
    %cst_6 = arith.constant 6.400000e+01 : f32
    %12 = vector.broadcast %cst_6 : f32 to vector<8x1xf32>
    %13 = arith.divf %11, %12 : vector<8x1xf32>
    %cst_7 = arith.constant 9.99999974E-6 : f32
    %14 = vector.broadcast %cst_7 : f32 to vector<8x1xf32>
    %15 = arith.addf %13, %14 : vector<8x1xf32>
    %16 = math.rsqrt %15 : vector<8x1xf32>
    %17 = vector.broadcast %16 : vector<8x1xf32> to vector<8x64xf32>
    %18 = arith.mulf %8, %17 : vector<8x64xf32>
    %19 = vector.extract_strided_slice %2 {offsets = [0, 0], sizes = [1, 64], strides = [1, 1]} : vector<4x64xf32> to vector<1x64xf32>
    %20 = vector.broadcast %19 : vector<1x64xf32> to vector<8x64xf32>
    %21 = arith.mulf %18, %20 : vector<8x64xf32>
    %22 = vector.extract_strided_slice %2 {offsets = [1, 0], sizes = [1, 64], strides = [1, 1]} : vector<4x64xf32> to vector<1x64xf32>
    %23 = vector.broadcast %22 : vector<1x64xf32> to vector<8x64xf32>
    %24 = arith.addf %21, %23 : vector<8x64xf32>
    %25 = arith.truncf %24 : vector<8x64xf32> to vector<8x64xbf16>
    %c0_8 = arith.constant 0 : index
    %c0_9 = arith.constant 0 : index
    %26 = vector.load %arg3[%c0_8, %c0_9] : memref<64x96xbf16, #tpu.memory_space<vmem>>, vector<64x96xbf16>
    %cst_10 = arith.constant dense<0.000000e+00> : vector<8x96xf32>
    %27 = tpu.matmul %25, %26, %cst_10 {dimension_numbers = #tpu.dot_dimension_numbers<[1], [0], [0], [1], [0, 0, 1, 1], [], []>} : vector<8x64xbf16>, vector<64x96xbf16>, vector<8x96xf32> -> vector<8x96xf32>
    %c0_11 = arith.constant 0 : index
    %c0_12 = arith.constant 0 : index
    %28 = vector.load %arg4[%c0_11, %c0_12] : memref<1x96xf32, #tpu.memory_space<vmem>>, vector<1x96xf32>
    %29 = vector.broadcast %28 : vector<1x96xf32> to vector<8x96xf32>
    %30 = arith.addf %27, %29 : vector<8x96xf32>
    %31 = vector.extract_strided_slice %30 {offsets = [0, 0], sizes = [8, 80], strides = [1, 1]} : vector<8x96xf32> to vector<8x80xf32>
    %32 = vector.extract_strided_slice %30 {offsets = [0, 80], sizes = [8, 16], strides = [1, 1]} : vector<8x96xf32> to vector<8x16xf32>
    %33 = arith.truncf %32 : vector<8x16xf32> to vector<8x16xbf16>
    %c0_13 = arith.constant 0 : index
    %c0_14 = arith.constant 0 : index
    %34 = vector.load %arg5[%c0_13, %c0_14] : memref<80x80xf32, #tpu.memory_space<vmem>>, vector<80x80xf32>
    %cst_15 = arith.constant dense<0.000000e+00> : vector<8x80xf32>
    %35 = tpu.matmul %31, %34, %cst_15 {dimension_numbers = #tpu.dot_dimension_numbers<[1], [0], [0], [1], [0, 0, 1, 1], [], []>} : vector<8x80xf32>, vector<80x80xf32>, vector<8x80xf32> -> vector<8x80xf32>
    %36 = arith.subf %31, %35 : vector<8x80xf32>
    %37 = arith.mulf %36, %36 : vector<8x80xf32>
    %cst_16 = arith.constant dense<0.000000e+00> : vector<8x80xf32>
    %38 = tpu.matmul %37, %34, %cst_16 {dimension_numbers = #tpu.dot_dimension_numbers<[1], [0], [0], [1], [0, 0, 1, 1], [], []>} : vector<8x80xf32>, vector<80x80xf32>, vector<8x80xf32> -> vector<8x80xf32>
    %cst_17 = arith.constant 9.99999974E-6 : f32
    %39 = vector.broadcast %cst_17 : f32 to vector<8x80xf32>
    %40 = arith.addf %38, %39 : vector<8x80xf32>
    %41 = math.rsqrt %40 : vector<8x80xf32>
    %42 = arith.mulf %36, %41 : vector<8x80xf32>
    %c0_18 = arith.constant 0 : index
    %c0_19 = arith.constant 0 : index
    %43 = vector.load %arg6[%c0_18, %c0_19] : memref<1x80xf32, #tpu.memory_space<vmem>>, vector<1x80xf32>
    %44 = vector.broadcast %43 : vector<1x80xf32> to vector<8x80xf32>
    %45 = arith.mulf %42, %44 : vector<8x80xf32>
    %c0_20 = arith.constant 0 : index
    %c0_21 = arith.constant 0 : index
    %46 = vector.load %arg7[%c0_20, %c0_21] : memref<1x80xf32, #tpu.memory_space<vmem>>, vector<1x80xf32>
    %47 = vector.broadcast %46 : vector<1x80xf32> to vector<8x80xf32>
    %48 = arith.addf %45, %47 : vector<8x80xf32>
    %49 = vector.extract_strided_slice %48 {offsets = [0, 0], sizes = [8, 64], strides = [1, 1]} : vector<8x80xf32> to vector<8x64xf32>
    %50 = arith.truncf %49 : vector<8x64xf32> to vector<8x64xbf16>
    %51 = vector.extract_strided_slice %48 {offsets = [0, 64], sizes = [8, 16], strides = [1, 1]} : vector<8x80xf32> to vector<8x16xf32>
    %52 = arith.truncf %51 : vector<8x16xf32> to vector<8x16xbf16>
    %c0_22 = arith.constant 0 : index
    %c0_23 = arith.constant 0 : index
    %53 = vector.load %arg8[%c0_22, %c0_23] : memref<32x8xf32, #tpu.memory_space<vmem>>, vector<32x8xf32>
    %54 = vector.extract_strided_slice %52 {offsets = [0, 0], sizes = [8, 8], strides = [1, 1]} : vector<8x16xbf16> to vector<8x8xbf16>
    %55 = vector.extract_strided_slice %33 {offsets = [0, 0], sizes = [8, 8], strides = [1, 1]} : vector<8x16xbf16> to vector<8x8xbf16>
    %56 = vector.extract_strided_slice %50 {offsets = [0, 0], sizes = [8, 8], strides = [1, 1]} : vector<8x64xbf16> to vector<8x8xbf16>
    %57 = vector.extract_strided_slice %50 {offsets = [0, 8], sizes = [8, 8], strides = [1, 1]} : vector<8x64xbf16> to vector<8x8xbf16>
    %58 = vector.extract_strided_slice %50 {offsets = [0, 16], sizes = [8, 8], strides = [1, 1]} : vector<8x64xbf16> to vector<8x8xbf16>
    %59 = vector.extract_strided_slice %50 {offsets = [0, 24], sizes = [8, 8], strides = [1, 1]} : vector<8x64xbf16> to vector<8x8xbf16>
    %60 = tpu.concatenate %56, %57, %58, %59 in 0 : vector<8x8xbf16>, vector<8x8xbf16>, vector<8x8xbf16>, vector<8x8xbf16> -> vector<32x8xbf16>
    %cst_24 = arith.constant dense<0.000000e+00> : vector<32x8xf32>
    %61 = tpu.matmul %60, %54, %cst_24 {dimension_numbers = #tpu.dot_dimension_numbers<[1], [1], [0], [0], [0, 0, 1, 0], [], []>} : vector<32x8xbf16>, vector<8x8xbf16>, vector<32x8xf32> -> vector<32x8xf32>
    %cst_25 = arith.constant 0.353553385 : f32
    %62 = vector.broadcast %cst_25 : f32 to vector<32x8xf32>
    %63 = arith.mulf %61, %62 : vector<32x8xf32>
    %64 = arith.addf %63, %53 : vector<32x8xf32>
    %cst_26 = arith.constant dense<0xFF800000> : vector<32xf32>
    %65 = vector.multi_reduction <maximumf>, %64, %cst_26 [1] : vector<32x8xf32> to vector<32xf32>
    %66 = vector.shape_cast %65 : vector<32xf32> to vector<32x1xf32>
    %67 = vector.broadcast %66 : vector<32x1xf32> to vector<32x8xf32>
    %68 = arith.subf %64, %67 : vector<32x8xf32>
    %69 = math.exp %68 : vector<32x8xf32>
    %cst_27 = arith.constant dense<0.000000e+00> : vector<32xf32>
    %70 = vector.multi_reduction <add>, %69, %cst_27 [1] : vector<32x8xf32> to vector<32xf32>
    %71 = vector.shape_cast %70 : vector<32xf32> to vector<32x1xf32>
    %72 = tpu.reciprocal %71 {approx = true} : vector<32x1xf32> -> vector<32x1xf32>
    %73 = vector.broadcast %72 : vector<32x1xf32> to vector<32x8xf32>
    %74 = arith.mulf %69, %73 : vector<32x8xf32>
    %75 = arith.truncf %74 : vector<32x8xf32> to vector<32x8xbf16>
    %cst_28 = arith.constant dense<0.000000e+00> : vector<32x8xf32>
    %76 = tpu.matmul %75, %55, %cst_28 {dimension_numbers = #tpu.dot_dimension_numbers<[1], [0], [0], [1], [0, 0, 1, 1], [], []>} : vector<32x8xbf16>, vector<8x8xbf16>, vector<32x8xf32> -> vector<32x8xf32>
    %77 = vector.extract_strided_slice %76 {offsets = [0, 0], sizes = [8, 8], strides = [1, 1]} : vector<32x8xf32> to vector<8x8xf32>
    %78 = vector.extract_strided_slice %76 {offsets = [8, 0], sizes = [8, 8], strides = [1, 1]} : vector<32x8xf32> to vector<8x8xf32>
    %79 = vector.extract_strided_slice %76 {offsets = [16, 0], sizes = [8, 8], strides = [1, 1]} : vector<32x8xf32> to vector<8x8xf32>
    %80 = vector.extract_strided_slice %76 {offsets = [24, 0], sizes = [8, 8], strides = [1, 1]} : vector<32x8xf32> to vector<8x8xf32>
    %81 = vector.extract_strided_slice %52 {offsets = [0, 8], sizes = [8, 8], strides = [1, 1]} : vector<8x16xbf16> to vector<8x8xbf16>
    %82 = vector.extract_strided_slice %33 {offsets = [0, 8], sizes = [8, 8], strides = [1, 1]} : vector<8x16xbf16> to vector<8x8xbf16>
    %83 = vector.extract_strided_slice %50 {offsets = [0, 32], sizes = [8, 8], strides = [1, 1]} : vector<8x64xbf16> to vector<8x8xbf16>
    %84 = vector.extract_strided_slice %50 {offsets = [0, 40], sizes = [8, 8], strides = [1, 1]} : vector<8x64xbf16> to vector<8x8xbf16>
    %85 = vector.extract_strided_slice %50 {offsets = [0, 48], sizes = [8, 8], strides = [1, 1]} : vector<8x64xbf16> to vector<8x8xbf16>
    %86 = vector.extract_strided_slice %50 {offsets = [0, 56], sizes = [8, 8], strides = [1, 1]} : vector<8x64xbf16> to vector<8x8xbf16>
    %87 = tpu.concatenate %83, %84, %85, %86 in 0 : vector<8x8xbf16>, vector<8x8xbf16>, vector<8x8xbf16>, vector<8x8xbf16> -> vector<32x8xbf16>
    %cst_29 = arith.constant dense<0.000000e+00> : vector<32x8xf32>
    %88 = tpu.matmul %87, %81, %cst_29 {dimension_numbers = #tpu.dot_dimension_numbers<[1], [1], [0], [0], [0, 0, 1, 0], [], []>} : vector<32x8xbf16>, vector<8x8xbf16>, vector<32x8xf32> -> vector<32x8xf32>
    %cst_30 = arith.constant 0.353553385 : f32
    %89 = vector.broadcast %cst_30 : f32 to vector<32x8xf32>
    %90 = arith.mulf %88, %89 : vector<32x8xf32>
    %91 = arith.addf %90, %53 : vector<32x8xf32>
    %cst_31 = arith.constant dense<0xFF800000> : vector<32xf32>
    %92 = vector.multi_reduction <maximumf>, %91, %cst_31 [1] : vector<32x8xf32> to vector<32xf32>
    %93 = vector.shape_cast %92 : vector<32xf32> to vector<32x1xf32>
    %94 = vector.broadcast %93 : vector<32x1xf32> to vector<32x8xf32>
    %95 = arith.subf %91, %94 : vector<32x8xf32>
    %96 = math.exp %95 : vector<32x8xf32>
    %cst_32 = arith.constant dense<0.000000e+00> : vector<32xf32>
    %97 = vector.multi_reduction <add>, %96, %cst_32 [1] : vector<32x8xf32> to vector<32xf32>
    %98 = vector.shape_cast %97 : vector<32xf32> to vector<32x1xf32>
    %99 = tpu.reciprocal %98 {approx = true} : vector<32x1xf32> -> vector<32x1xf32>
    %100 = vector.broadcast %99 : vector<32x1xf32> to vector<32x8xf32>
    %101 = arith.mulf %96, %100 : vector<32x8xf32>
    %102 = arith.truncf %101 : vector<32x8xf32> to vector<32x8xbf16>
    %cst_33 = arith.constant dense<0.000000e+00> : vector<32x8xf32>
    %103 = tpu.matmul %102, %82, %cst_33 {dimension_numbers = #tpu.dot_dimension_numbers<[1], [0], [0], [1], [0, 0, 1, 1], [], []>} : vector<32x8xbf16>, vector<8x8xbf16>, vector<32x8xf32> -> vector<32x8xf32>
    %104 = vector.extract_strided_slice %103 {offsets = [0, 0], sizes = [8, 8], strides = [1, 1]} : vector<32x8xf32> to vector<8x8xf32>
    %105 = vector.extract_strided_slice %103 {offsets = [8, 0], sizes = [8, 8], strides = [1, 1]} : vector<32x8xf32> to vector<8x8xf32>
    %106 = vector.extract_strided_slice %103 {offsets = [16, 0], sizes = [8, 8], strides = [1, 1]} : vector<32x8xf32> to vector<8x8xf32>
    %107 = vector.extract_strided_slice %103 {offsets = [24, 0], sizes = [8, 8], strides = [1, 1]} : vector<32x8xf32> to vector<8x8xf32>
    %108 = tpu.concatenate %77, %78, %79, %80, %104, %105, %106, %107 in 1 : vector<8x8xf32>, vector<8x8xf32>, vector<8x8xf32>, vector<8x8xf32>, vector<8x8xf32>, vector<8x8xf32>, vector<8x8xf32>, vector<8x8xf32> -> vector<8x64xf32>
    %109 = arith.truncf %108 : vector<8x64xf32> to vector<8x64xbf16>
    %c0_34 = arith.constant 0 : index
    %c0_35 = arith.constant 0 : index
    %110 = vector.load %arg9[%c0_34, %c0_35] : memref<64x64xbf16, #tpu.memory_space<vmem>>, vector<64x64xbf16>
    %cst_36 = arith.constant dense<0.000000e+00> : vector<8x64xf32>
    %111 = tpu.matmul %109, %110, %cst_36 {dimension_numbers = #tpu.dot_dimension_numbers<[1], [0], [0], [1], [0, 0, 1, 1], [], []>} : vector<8x64xbf16>, vector<64x64xbf16>, vector<8x64xf32> -> vector<8x64xf32>
    %112 = arith.addf %1, %111 : vector<8x64xf32>
    %c0_37 = arith.constant 0 : index
    %c0_38 = arith.constant 0 : index
    %113 = vector.load %arg10[%c0_37, %c0_38] : memref<1x64xf32, #tpu.memory_space<vmem>>, vector<1x64xf32>
    %114 = vector.broadcast %113 : vector<1x64xf32> to vector<8x64xf32>
    %115 = arith.addf %112, %114 : vector<8x64xf32>
    %cst_39 = arith.constant dense<0.000000e+00> : vector<8xf32>
    %116 = vector.multi_reduction <add>, %115, %cst_39 [1] : vector<8x64xf32> to vector<8xf32>
    %117 = vector.shape_cast %116 : vector<8xf32> to vector<8x1xf32>
    %cst_40 = arith.constant 6.400000e+01 : f32
    %118 = vector.broadcast %cst_40 : f32 to vector<8x1xf32>
    %119 = arith.divf %117, %118 : vector<8x1xf32>
    %120 = vector.broadcast %119 : vector<8x1xf32> to vector<8x64xf32>
    %121 = arith.subf %115, %120 : vector<8x64xf32>
    %122 = arith.mulf %121, %121 : vector<8x64xf32>
    %cst_41 = arith.constant dense<0.000000e+00> : vector<8xf32>
    %123 = vector.multi_reduction <add>, %122, %cst_41 [1] : vector<8x64xf32> to vector<8xf32>
    %124 = vector.shape_cast %123 : vector<8xf32> to vector<8x1xf32>
    %cst_42 = arith.constant 6.400000e+01 : f32
    %125 = vector.broadcast %cst_42 : f32 to vector<8x1xf32>
    %126 = arith.divf %124, %125 : vector<8x1xf32>
    %cst_43 = arith.constant 9.99999974E-6 : f32
    %127 = vector.broadcast %cst_43 : f32 to vector<8x1xf32>
    %128 = arith.addf %126, %127 : vector<8x1xf32>
    %129 = math.rsqrt %128 : vector<8x1xf32>
    %130 = vector.broadcast %129 : vector<8x1xf32> to vector<8x64xf32>
    %131 = arith.mulf %121, %130 : vector<8x64xf32>
    %132 = vector.extract_strided_slice %2 {offsets = [2, 0], sizes = [1, 64], strides = [1, 1]} : vector<4x64xf32> to vector<1x64xf32>
    %133 = vector.broadcast %132 : vector<1x64xf32> to vector<8x64xf32>
    %134 = arith.mulf %131, %133 : vector<8x64xf32>
    %135 = vector.extract_strided_slice %2 {offsets = [3, 0], sizes = [1, 64], strides = [1, 1]} : vector<4x64xf32> to vector<1x64xf32>
    %136 = vector.broadcast %135 : vector<1x64xf32> to vector<8x64xf32>
    %137 = arith.addf %134, %136 : vector<8x64xf32>
    %138 = arith.truncf %137 : vector<8x64xf32> to vector<8x64xbf16>
    %c0_44 = arith.constant 0 : index
    %c0_45 = arith.constant 0 : index
    %139 = vector.load %arg11[%c0_44, %c0_45] : memref<64x256xbf16, #tpu.memory_space<vmem>>, vector<64x256xbf16>
    %cst_46 = arith.constant dense<0.000000e+00> : vector<8x256xf32>
    %140 = tpu.matmul %138, %139, %cst_46 {dimension_numbers = #tpu.dot_dimension_numbers<[1], [0], [0], [1], [0, 0, 1, 1], [], []>} : vector<8x64xbf16>, vector<64x256xbf16>, vector<8x256xf32> -> vector<8x256xf32>
    %c0_47 = arith.constant 0 : index
    %c0_48 = arith.constant 0 : index
    %141 = vector.load %arg12[%c0_47, %c0_48] : memref<1x256xf32, #tpu.memory_space<vmem>>, vector<1x256xf32>
    %142 = vector.broadcast %141 : vector<1x256xf32> to vector<8x256xf32>
    %143 = arith.addf %140, %142 : vector<8x256xf32>
    %cst_49 = arith.constant 5.000000e-01 : f32
    %144 = vector.broadcast %cst_49 : f32 to vector<8x256xf32>
    %145 = arith.mulf %144, %143 : vector<8x256xf32>
    %cst_50 = arith.constant 0.707106769 : f32
    %146 = vector.broadcast %cst_50 : f32 to vector<8x256xf32>
    %147 = arith.mulf %143, %146 : vector<8x256xf32>
    %148 = math.erf %147 : vector<8x256xf32>
    %cst_51 = arith.constant 1.000000e+00 : f32
    %149 = vector.broadcast %cst_51 : f32 to vector<8x256xf32>
    %150 = arith.addf %149, %148 : vector<8x256xf32>
    %151 = arith.mulf %145, %150 : vector<8x256xf32>
    %152 = arith.truncf %151 : vector<8x256xf32> to vector<8x256xbf16>
    %c0_52 = arith.constant 0 : index
    %c0_53 = arith.constant 0 : index
    %153 = vector.load %arg13[%c0_52, %c0_53] : memref<256x64xbf16, #tpu.memory_space<vmem>>, vector<256x64xbf16>
    %cst_54 = arith.constant dense<0.000000e+00> : vector<8x64xf32>
    %154 = tpu.matmul %152, %153, %cst_54 {dimension_numbers = #tpu.dot_dimension_numbers<[1], [0], [0], [1], [0, 0, 1, 1], [], []>} : vector<8x256xbf16>, vector<256x64xbf16>, vector<8x64xf32> -> vector<8x64xf32>
    %c0_55 = arith.constant 0 : index
    %c0_56 = arith.constant 0 : index
    %155 = vector.load %arg14[%c0_55, %c0_56] : memref<1x64xf32, #tpu.memory_space<vmem>>, vector<1x64xf32>
    %156 = vector.broadcast %155 : vector<1x64xf32> to vector<8x64xf32>
    %157 = arith.addf %154, %156 : vector<8x64xf32>
    %158 = arith.addf %115, %157 : vector<8x64xf32>
    %c0_57 = arith.constant 0 : index
    %c0_58 = arith.constant 0 : index
    %c0_59 = arith.constant 0 : index
    %159 = vector.load %arg15[%c0_57, %c0_58, %c0_59] : memref<1x8x64xf32, #tpu.memory_space<vmem>>, vector<1x8x64xf32>
    %160 = vector.shape_cast %159 : vector<1x8x64xf32> to vector<8x64xf32>
    %161 = vector.shape_cast %158 : vector<8x64xf32> to vector<1x8x64xf32>
    tpu.vector_store %arg15[%c0_57, %c0_58, %c0_59], %161 {strides = array<i32>} : memref<1x8x64xf32, #tpu.memory_space<vmem>>, vector<1x8x64xf32>,
    return
  }
  func.func @transform_0(%arg0: i32) -> (i32, i32, i32) {
    %c0_i32 = arith.constant 0 : i32
    %c0_i32_0 = arith.constant 0 : i32
    %c0_i32_1 = arith.constant 0 : i32
    return %arg0, %c0_i32, %c0_i32_0 : i32, i32, i32
  }
  func.func @transform_1(%arg0: i32) -> (i32, i32) {
    %c0_i32 = arith.constant 0 : i32
    %c0_i32_0 = arith.constant 0 : i32
    %c0_i32_1 = arith.constant 0 : i32
    return %c0_i32, %c0_i32_0 : i32, i32
  }
  func.func @transform_2(%arg0: i32) -> (i32, i32) {
    %c0_i32 = arith.constant 0 : i32
    %c0_i32_0 = arith.constant 0 : i32
    %c0_i32_1 = arith.constant 0 : i32
    return %c0_i32, %c0_i32_0 : i32, i32
  }
  func.func @transform_3(%arg0: i32) -> (i32, i32) {
    %c0_i32 = arith.constant 0 : i32
    %c0_i32_0 = arith.constant 0 : i32
    %c0_i32_1 = arith.constant 0 : i32
    return %c0_i32, %c0_i32_0 : i32, i32
  }
  func.func @transform_4(%arg0: i32) -> (i32, i32) {
    %c0_i32 = arith.constant 0 : i32
    %c0_i32_0 = arith.constant 0 : i32
    %c0_i32_1 = arith.constant 0 : i32
    return %c0_i32, %c0_i32_0 : i32, i32
  }
  func.func @transform_5(%arg0: i32) -> (i32, i32) {
    %c0_i32 = arith.constant 0 : i32
    %c0_i32_0 = arith.constant 0 : i32
    %c0_i32_1 = arith.constant 0 : i32
    return %c0_i32, %c0_i32_0 : i32, i32
  }
  func.func @transform_6(%arg0: i32) -> (i32, i32) {
    %c0_i32 = arith.constant 0 : i32
    %c0_i32_0 = arith.constant 0 : i32
    %c0_i32_1 = arith.constant 0 : i32
    return %c0_i32, %c0_i32_0 : i32, i32
  }
  func.func @transform_7(%arg0: i32) -> (i32, i32) {
    %c0_i32 = arith.constant 0 : i32
    %c0_i32_0 = arith.constant 0 : i32
    %c0_i32_1 = arith.constant 0 : i32
    return %c0_i32, %c0_i32_0 : i32, i32
  }
  func.func @transform_8(%arg0: i32) -> (i32, i32) {
    %c0_i32 = arith.constant 0 : i32
    %c0_i32_0 = arith.constant 0 : i32
    %c0_i32_1 = arith.constant 0 : i32
    return %c0_i32, %c0_i32_0 : i32, i32
  }
  func.func @transform_9(%arg0: i32) -> (i32, i32) {
    %c0_i32 = arith.constant 0 : i32
    %c0_i32_0 = arith.constant 0 : i32
    %c0_i32_1 = arith.constant 0 : i32
    return %c0_i32, %c0_i32_0 : i32, i32
  }
  func.func @transform_10(%arg0: i32) -> (i32, i32) {
    %c0_i32 = arith.constant 0 : i32
    %c0_i32_0 = arith.constant 0 : i32
    %c0_i32_1 = arith.constant 0 : i32
    return %c0_i32, %c0_i32_0 : i32, i32
  }
  func.func @transform_11(%arg0: i32) -> (i32, i32) {
    %c0_i32 = arith.constant 0 : i32
    %c0_i32_0 = arith.constant 0 : i32
    %c0_i32_1 = arith.constant 0 : i32
    return %c0_i32, %c0_i32_0 : i32, i32
  }
  func.func @transform_12(%arg0: i32) -> (i32, i32) {
    %c0_i32 = arith.constant 0 : i32
    %c0_i32_0 = arith.constant 0 : i32
    %c0_i32_1 = arith.constant 0 : i32
    return %c0_i32, %c0_i32_0 : i32, i32
  }
  func.func @transform_13(%arg0: i32) -> (i32, i32) {
    %c0_i32 = arith.constant 0 : i32
    %c0_i32_0 = arith.constant 0 : i32
    %c0_i32_1 = arith.constant 0 : i32
    return %c0_i32, %c0_i32_0 : i32, i32
  }
  func.func @transform_14(%arg0: i32) -> (i32, i32, i32) {
    %c0_i32 = arith.constant 0 : i32
    %c0_i32_0 = arith.constant 0 : i32
    %c0_i32_1 = arith.constant 0 : i32
    return %arg0, %c0_i32, %c0_i32_0 : i32, i32, i32
  }
}

module attributes {stable_mosaic.version = 11 : i64} {
  func.func @_final_kernel(%arg0: i32, %arg1: memref<8x64xf32, #tpu.memory_space<vmem>>, %arg2: memref<2x64xf32, #tpu.memory_space<vmem>>, %arg3: memref<64x256xbf16, #tpu.memory_space<vmem>>, %arg4: memref<8x256xf32, #tpu.memory_space<vmem>>) attributes {dimension_semantics = [#tpu.dimension_semantics<parallel>], iteration_bounds = array<i64: 2>, scalar_prefetch = 0 : i64, scratch_operands = 0 : i64, tpu.core_type = #tpu.core_type<tc>, window_params = [{transform_indices = @transform_0, window_bounds = array<i64: 8, 64>}, {pipeline_mode = #tpu.pipeline_mode<synchronous>, transform_indices = @transform_1, window_bounds = array<i64: 2, 64>}, {pipeline_mode = #tpu.pipeline_mode<synchronous>, transform_indices = @transform_2, window_bounds = array<i64: 64, 256>}, {transform_indices = @transform_3, window_bounds = array<i64: 8, 256>}]} {
    %c0 = arith.constant 0 : index
    %c0_0 = arith.constant 0 : index
    %0 = vector.load %arg1[%c0, %c0_0] : memref<8x64xf32, #tpu.memory_space<vmem>>, vector<8x64xf32>
    %c0_1 = arith.constant 0 : index
    %c0_2 = arith.constant 0 : index
    %1 = vector.load %arg2[%c0_1, %c0_2] : memref<2x64xf32, #tpu.memory_space<vmem>>, vector<2x64xf32>
    %cst = arith.constant dense<0.000000e+00> : vector<8xf32>
    %2 = vector.multi_reduction <add>, %0, %cst [1] : vector<8x64xf32> to vector<8xf32>
    %3 = vector.shape_cast %2 : vector<8xf32> to vector<8x1xf32>
    %cst_3 = arith.constant 6.400000e+01 : f32
    %4 = vector.broadcast %cst_3 : f32 to vector<8x1xf32>
    %5 = arith.divf %3, %4 : vector<8x1xf32>
    %6 = vector.broadcast %5 : vector<8x1xf32> to vector<8x64xf32>
    %7 = arith.subf %0, %6 : vector<8x64xf32>
    %8 = arith.mulf %7, %7 : vector<8x64xf32>
    %cst_4 = arith.constant dense<0.000000e+00> : vector<8xf32>
    %9 = vector.multi_reduction <add>, %8, %cst_4 [1] : vector<8x64xf32> to vector<8xf32>
    %10 = vector.shape_cast %9 : vector<8xf32> to vector<8x1xf32>
    %cst_5 = arith.constant 6.400000e+01 : f32
    %11 = vector.broadcast %cst_5 : f32 to vector<8x1xf32>
    %12 = arith.divf %10, %11 : vector<8x1xf32>
    %cst_6 = arith.constant 9.99999974E-6 : f32
    %13 = vector.broadcast %cst_6 : f32 to vector<8x1xf32>
    %14 = arith.addf %12, %13 : vector<8x1xf32>
    %15 = math.rsqrt %14 : vector<8x1xf32>
    %16 = vector.broadcast %15 : vector<8x1xf32> to vector<8x64xf32>
    %17 = arith.mulf %7, %16 : vector<8x64xf32>
    %18 = vector.extract_strided_slice %1 {offsets = [0, 0], sizes = [1, 64], strides = [1, 1]} : vector<2x64xf32> to vector<1x64xf32>
    %19 = vector.broadcast %18 : vector<1x64xf32> to vector<8x64xf32>
    %20 = arith.mulf %17, %19 : vector<8x64xf32>
    %21 = vector.extract_strided_slice %1 {offsets = [1, 0], sizes = [1, 64], strides = [1, 1]} : vector<2x64xf32> to vector<1x64xf32>
    %22 = vector.broadcast %21 : vector<1x64xf32> to vector<8x64xf32>
    %23 = arith.addf %20, %22 : vector<8x64xf32>
    %24 = arith.truncf %23 : vector<8x64xf32> to vector<8x64xbf16>
    %c0_7 = arith.constant 0 : index
    %c0_8 = arith.constant 0 : index
    %25 = vector.load %arg3[%c0_7, %c0_8] : memref<64x256xbf16, #tpu.memory_space<vmem>>, vector<64x256xbf16>
    %cst_9 = arith.constant dense<0.000000e+00> : vector<8x256xf32>
    %26 = tpu.matmul %24, %25, %cst_9 {dimension_numbers = #tpu.dot_dimension_numbers<[1], [0], [0], [1], [0, 0, 1, 1], [], []>} : vector<8x64xbf16>, vector<64x256xbf16>, vector<8x256xf32> -> vector<8x256xf32>
    %c0_10 = arith.constant 0 : index
    %c0_11 = arith.constant 0 : index
    %27 = vector.load %arg4[%c0_10, %c0_11] : memref<8x256xf32, #tpu.memory_space<vmem>>, vector<8x256xf32>
    tpu.vector_store %arg4[%c0_10, %c0_11], %26 {strides = array<i32>} : memref<8x256xf32, #tpu.memory_space<vmem>>, vector<8x256xf32>,
    return
  }
  func.func @transform_0(%arg0: i32) -> (i32, i32) {
    %c0_i32 = arith.constant 0 : i32
    %c0_i32_0 = arith.constant 0 : i32
    return %arg0, %c0_i32 : i32, i32
  }
  func.func @transform_1(%arg0: i32) -> (i32, i32) {
    %c0_i32 = arith.constant 0 : i32
    %c0_i32_0 = arith.constant 0 : i32
    %c0_i32_1 = arith.constant 0 : i32
    return %c0_i32, %c0_i32_0 : i32, i32
  }
  func.func @transform_2(%arg0: i32) -> (i32, i32) {
    %c0_i32 = arith.constant 0 : i32
    %c0_i32_0 = arith.constant 0 : i32
    %c0_i32_1 = arith.constant 0 : i32
    return %c0_i32, %c0_i32_0 : i32, i32
  }
  func.func @transform_3(%arg0: i32) -> (i32, i32) {
    %c0_i32 = arith.constant 0 : i32
    %c0_i32_0 = arith.constant 0 : i32
    return %arg0, %c0_i32 : i32, i32
  }
}

</mosaic_0001>

<bundles_post_ra>
// kernel: forward.5
= control target key start
LH: loop header
LB: loop body
LE: loop exit
PB: predicated region body
PF: predicated region fallthrough
CT: control target
= control target key end

     0   :  { %8 = vsyncpa [#allocation3], 0  ;;  %s654_s0 = inlined_call_operand.vmem [shape: f32[16,64], index: 0, kind: input, shape index: {}]   ;;  %s655_s1 = inlined_call_operand.vmem [shape: f32[2,64], index: 1, kind: input, shape index: {}]   ;;  %s656_s2 = inlined_call_operand.vmem [shape: bf16[64,256], index: 2, kind: input, shape index: {}]   ;;  %s657_s3 = inlined_call_operand.hbm [shape: f32[16,256], index: 3, kind: output, shape index: {}]  }
   0x1   :  { %10 = vsyncpa [#allocation3 + $0x1], 0  ;;  %s524_s12 = smov 0   ;;  %s526_s13 = smov 0  }
   0x2   :  { %s528_s14 = smov 0   ;;  %s530_s15 = smov 0  }
   0x3 LB: > { %s545_s16 = sadd.s32 4294967295, %s500_s15   ;;  %s363_s17 = sadd.s32 4294967294, %s500_s15   ;;  %s500_s15 = sphi %s530_s15, %s663_s15   ;;  %s496_s14 = sphi %s528_s14, %s662_s14   ;;  %s492_s13 = sphi %s526_s13, %s661_s13   ;;  %s488_s12 = sphi %s524_s12, %s660_s12  }
   0x4   : > { %s549_s18 = sadd.s32 1, %s500_s15   ;;  %s91_s19 = sadd.s32 1, %s496_s14 }
   0x5   : > { %s88_s20 = ssub.s32 %s500_s15, %s549_s18  ;;  %p101_p0 = scmp.ne.s32.totalorder %s496_s14, %s492_s13 }
   0x6   : > { %p89_p1 = scmp.eq.s32.totalorder %s88_s20, 0  ;;  %p102_p2 = scmp.eq.s32.totalorder %s545_s16, 1 }
   0x7   : > { %p107_p3 = scmp.ne.s32.totalorder %s492_s13, %s488_s12  ;;  %p108_p4 = scmp.eq.s32.totalorder %s363_s17, 1 }
   0x8   : > { %s560_s21 = scalar_select %p89_p1, %s496_s14, %s91_s19  }
   0x9   : > { %p562_p5 = por %p102_p2, %p101_p0  ;;  %p566_p6 = por %p108_p4, %p107_p3 }
   0xa   : > { %p366_p7 = scmp.ge.s32.totalorder %s500_s15, 1  ;;  %p139_p8 = scmp.lt.s32.totalorder %s500_s15, 3 }
   0xc   : > { %p140_p9 = pnand %p366_p7, %p139_p8 }
   0xd   : > { %p162_p10 = scmp.lt.s32.totalorder (!%p140_p9), %s545_s16, 1  ;;  %vm169_vm0 = vcmask (!%p140_p9), 523264   ;;  %v424_v7 = vld [vmem:[%s656_s2 + $0x4] ss:$8 sps:$4 sm:$0xff] (!%p140_p9)   ;;  %v426_v8 = vld [vmem:[%s656_s2] ss:$8 sps:$4 sm:$0xff] (!%p140_p9)   ;;  %v184_v18 = vlaneseq (!%p140_p9) }
   0xe   : > { %143 = sbr.rel (%p140_p9) target bundleno = 569 (0x239), region = 32  ;;  %246 = vmatprep.subr.bf16.mxu0 (!%p140_p9), %v424_v7  ;;  %v427_v9 = vld [vmem:[%s656_s2 + $0x14] ss:$8 sps:$4 sm:$0xff] (!%p140_p9)   ;;  %v429_v10 = vld [vmem:[%s656_s2 + $0x10] ss:$8 sps:$4 sm:$0xff] (!%p140_p9)   ;;  %v502_v15 = vmov (!%p140_p9), 0  }
   0xf   : > { %247 = vmatpush1.bf16.msra.mxu0 (!%p140_p9), %v426_v8  ;;  %v430_v11 = vld [vmem:[%s656_s2 + $0x24] ss:$8 sps:$4 sm:$0xff] (!%p140_p9)   ;;  %v432_v12 = vld [vmem:[%s656_s2 + $0x20] ss:$8 sps:$4 sm:$0xff] (!%p140_p9)   ;;  %v433_v13 = vld [vmem:[%s656_s2 + $0x34] ss:$8 sps:$4 sm:$0xff] (!%p140_p9)   ;;  %278 = vmatprep.mubr.bf16.mxu0 (!%p140_p9), %v502_v15 }
  0x10   : > { %248 = vmatprep.subr.bf16.mxu0 (!%p140_p9), %v427_v9  ;;  %v435_v14 = vld [vmem:[%s656_s2 + $0x30] ss:$8 sps:$4 sm:$0xff] (!%p140_p9)   ;;  %v185_v20 = vshrl.u32 (!%p140_p9), %v184_v18, 7  ;;  %v168_v22 = vld [vmem:[%s655_s1] sm:$0x3] (!%p140_p9)  ;;  %s159_s29 = sand.u32 (!%p140_p9), 1, %s492_s13  }
  0x11   : > { %s367_s30 = sshll.u32 (!%p140_p9), %s159_s29, 4  ;;  %s383_s6 = sshll.u32 (!%p140_p9), %s545_s16, 8 }
  0x12   : > { %v186_v21 = vsub.s32 (!%p140_p9), 0, %v185_v20  ;;  %v191_v23 = vsub.s32 (!%p140_p9), 1, %v185_v20  ;;  %s161_s4 = scalar_lea.vmem (!%p140_p9), [#allocation2], %s367_s30  ;;  %s614_s9 = scalar_lea.hbm (!%p140_p9), %s657_s3, %s383_s6 }
  0x13   : > { %249 = vmatpush1.bf16.msra.mxu0 (!%p140_p9), %v429_v10  ;;  %s304_s5 = sshll.u32 (!%p140_p9), %s161_s4, 4  ;;  %s290_s10 = scalar_lea.sflag (!%p140_p9), [#allocation3], %s159_s29  ;;  %s609_s5 = int_to_ptr.vmem [resolvable:$true] %s304_s5 }
  0x14   : > { %250 = vmatprep.subr.bf16.mxu0 (!%p140_p9), %v430_v11  ;;  %v187_v24 = vrot.slane (!%p140_p9), %v168_v22, %v186_v21  ;;  %v192_v27 = vrot.slane (!%p140_p9), %v168_v22, %v191_v23  ;;  %s438_s11 = scalar_lea.vmem (!%p140_p9), %s609_s5, 256 }
  0x15   : > { %s163_s24 = scalar_select %p162_p10, %s545_s16, 1 }
  0x16   : > { %p439_p11 = scmp.ne.s32.totalorder %s609_s5, %s438_s11  ;;  %s503_s16 = smov [#allocation2]  }
  0x17   : > { %s368_s25 = sshll.u32 %s163_s24, 3  ;;  %251 = vmatpush1.bf16.msra.mxu0 %v432_v12  ;;  %s442_s17 = sshll.u32 %s503_s16, 4  ;;  %s443_s17 = int_to_ptr.vmem [resolvable:$false] %s442_s17 }
  0x18   : > { %s165_s28 = scalar_lea.vmem %s654_s0, %s368_s25  ;;  %252 = vmatprep.subr.bf16.mxu0 %v433_v13  ;;  %p440_p12 = pnand %p439_p11, %p562_p5 }
  0x19   : > { %v167_v0 = vld [vmem:[%s165_s28] sm:$0xff]  ;;  %s444_s19 = scalar_lea.vmem %s443_s17, 512  ;;  %p445_p0 = scmp.lt.s32.totalorder %s609_s5, %s443_s17 }
  0x1a   : > { %v170_v1 = vsel %vm169_vm0, %v167_v0, 0.0  ;;  %p441_p13 = pneg %p440_p12  ;;  %p446_p1 = scmp.lt.s32.totalorder %s444_s19, %s438_s11 }
  0x1b   : > { %171 = vadd.xlane.f32.xlu0 %v170_v1  ;;  %253 = vmatpush1.bf16.msra.mxu0 %v435_v14 }
  0x1c   : > { %p447_p2 = por %p446_p1, %p445_p0 }
  0x1e   : > { %p448_p3 = pnand %p447_p2, %p441_p13 }
  0xa8   : > { %v172_v2 = vpop.xlane.xlu0 %171 }
  0xa9   : > { %v174_v3 = vmul.f32 0.015625, %v172_v2 }
  0xab   : > { %v175_v4 = vsub.f32 %v167_v0, %v174_v3 }
  0xad   : > { %v176_v5 = vmul.f32 %v175_v4, %v175_v4 }
  0xaf   : > { %v177_v6 = vsel %vm169_vm0, %v176_v5, 0.0 }
  0xb0   : > { %178 = vadd.xlane.f32.xlu0 %v177_v6 }
 0x13d   : > { %v179_v16 = vpop.xlane.xlu0 %178 }
 0x13e   : > { %v180_v17 = vmul.f32 0.015625, %v179_v16 }
 0x140   : > { %v181_v19 = vadd.f32 1e-05, %v180_v17 }
 0x142   : > { %436 = vrsqrt.f32 %v181_v19 }
 0x14c   : > { %v437_v25 = vpop.eup %436 }
 0x14d   : > { %v183_v26 = vmul.f32 %v437_v25, %v175_v4 }
 0x14f   : > { %v188_v28 = vmul.f32 %v187_v24, %v183_v26 }
 0x151   : > { %v193_v29 = vadd.f32 %v192_v27, %v188_v28 }
 0x153   : > { %v194_v30 = vpack.c.bf16 %v193_v29, %v193_v29 }
 0x155   : > { %377 = vmatmul.mubr.msk.bf16.vlgmr.msra.gmra.mrb[0].mxu0 %vm169_vm0, %v194_v30 }
 0x228   : > { %v280_v31 = vpop.f32.mrb[0].mxu0 }
 0x229   : > { %287 = vst [vmem:[%s161_s4] sm:$0xff] %v280_v31  ;;  %v282_v32 = vpop.f32.mrb[1].mxu0 }
 0x22a   : > { %288 = vst [vmem:[%s161_s4 + $0x8] sm:$0xff] %v282_v32  ;;  %v284_v33 = vpop.f32.mrb[2].mxu0 }
 0x22b   : > { %v285_v34 = vpop.f32.mrb[3].mxu0 }
 0x22c   : > { %451 = shalt.err (!%p448_p3)
}
 0x22d   : > { %s452_s20 = scalar_lea.hbm %s614_s9, 256  ;;  %s456_s26 = scalar_lea.hbm %s657_s3, 512 }
 0x22e   : > { %p453_p4 = scmp.ne.s32.totalorder %s614_s9, %s452_s20  ;;  %p457_p9 = scmp.lt.u32.totalorder %s614_s9, %s657_s3 }
 0x22f   : > { %p458_p10 = scmp.lt.u32.totalorder %s456_s26, %s452_s20  ;;  %p460_p12 = scmp.lt.u32.totalorder %s452_s20, %s614_s9 }
 0x230   : > { %p454_p7 = pnand %p453_p4, %p562_p5 }
 0x231   : > { %p459_p11 = por %p458_p10, %p457_p9 }
 0x232   : > { %p455_p8 = pneg %p454_p7 }
 0x233   : > { %p461_p13 = por %p460_p12, %p459_p11 }
 0x235   : > { %p462_p0 = pnand %p461_p13, %p455_p8 }
 0x237   : > { %465 = shalt.err (!%p462_p0)
}
 0x238   : > { %384 = dma.vmem_to_hbm [thread:$0]  (%p562_p5), %s609_s5, 256, %s614_s9, %s290_s10  }
 0x239 PF: > { %p390_p1 = scmp.ge.s32.totalorder %s500_s15, 2  ;;  %s316_s29 = sand.u32 1, %s488_s12  }
 0x23a   : > { %s317_s30 = scalar_lea.sflag [#allocation3], %s316_s29 }
 0x23b   : > { %p387_p2 = pnand %p390_p1, %p566_p6 }
 0x23d   : > { %483 = dma.done.wait (!%p387_p2), %s317_s30, 256  }
 0x23e   : > { %485 = vsyncadd (!%p387_p2), %s317_s30, 4294967040  ;;  %p13_p3 = scmp.ge.s32.totalorder %s549_s18, 4   ;;  %s660_s12 = smov %s492_s13 }
 0x23f   : > { %s661_s13 = smov %s496_s14  ;;  %s662_s14 = smov %s560_s21 }
 0x240   : > { %s663_s15 = smov %s549_s18  ;;  %15 = sbr.rel (!%p13_p3) target bundleno = 3 (0x3), region = 67 }
 0x247   :  { %322 = vsyncpa [#allocation3], 1 }
 0x248   :  { %324 = vsyncpa [#allocation3 + $0x1], 1 }

// kernel: forward.3
= control target key start
LH: loop header
LB: loop body
LE: loop exit
PB: predicated region body
PF: predicated region fallthrough
CT: control target
= control target key end

     0   :  { %s2076_s29 = smov 0   ;;  %s2360_s0 = inlined_call_operand.vmem [shape: f32[2,8,64], index: 0, kind: input, shape index: {}]   ;;  %s2361_s1 = inlined_call_operand.vmem [shape: f32[4,64], index: 1, kind: input, shape index: {}]   ;;  %s2362_s2 = inlined_call_operand.vmem [shape: bf16[64,96], index: 2, kind: input, shape index: {}]   ;;  %s2363_s3 = inlined_call_operand.vmem [shape: f32[1,96], index: 3, kind: input, shape index: {}]   ;;  %s2364_s4 = inlined_call_operand.vmem [shape: f32[80,80], index: 4, kind: input, shape index: {}]   ;;  %s2365_s5 = inlined_call_operand.vmem [shape: f32[1,80], index: 5, kind: input, shape index: {}]   ;;  %s2366_s6 = inlined_call_operand.vmem [shape: f32[1,80], index: 6, kind: input, shape index: {}]   ;;  %s2367_s7 = inlined_call_operand.vmem [shape: f32[32,8], index: 7, kind: input, shape index: {}]   ;;  %s2368_s8 = inlined_call_operand.vmem [shape: bf16[64,64], index: 8, kind: input, shape index: {}]   ;;  %s2369_s9 = inlined_call_operand.vmem [shape: f32[1,64], index: 9, kind: input, shape index: {}]   ;;  %s2370_s10 = inlined_call_operand.vmem [shape: bf16[64,256], index: 10, kind: input, shape index: {}]   ;;  %s2371_s11 = inlined_call_operand.vmem [shape: f32[1,256], index: 11, kind: input, shape index: {}]   ;;  %s2372_s12 = inlined_call_operand.vmem [shape: bf16[256,64], index: 12, kind: input, shape index: {}]   ;;  %s2373_s13 = inlined_call_operand.vmem [shape: f32[1,64], index: 13, kind: input, shape index: {}]   ;;  %s2374_s14 = inlined_call_operand.vmem [shape: f32[2,8,64], index: 14, kind: output, shape index: {}]  }
   0x1 LB: > { %s1622_s30 = sadd.s32 4294967295, %s1983_s29   ;;  %p1626_p0 = scmp.ge.s32.totalorder %s1983_s29, 1  ;;  %s1983_s29 = sphi %s2076_s29, %s24_s29  }
   0x2   : > { %p411_p1 = scmp.lt.s32.totalorder %s1983_s29, 3 }
   0x4   : > { %p412_p2 = pnand %p1626_p0, %p411_p1 }
   0x5   : > { %p455_p3 = scmp.lt.s32.totalorder (!%p412_p2), %s1622_s30, 1  ;;  %vm466_vm0 = vcmask (!%p412_p2), 523264   ;;  %v1899_v7 = vld [vmem:[%s2362_s2] sm:$0xff] (!%p412_p2)   ;;  %v1985_v8 = vmov (!%p412_p2), 0.0   ;;  %vm1986_vm1 = vmmov (!%p412_p2), 0   ;;  %v1900_v9 = vld [vmem:[%s2362_s2 + $0x8] sm:$0xff] (!%p412_p2)   ;;  %v481_v27 = vlaneseq (!%p412_p2) }
   0x6   : > { %415 = sbr.rel (%p412_p2) target bundleno = 3099 (0xc1b), region = 76  ;;  %1747 = vmatprep.subr.bf16.mxu1 (!%p412_p2), %v1985_v8  ;;  %1755 = vmatprep.mubr.msk.bf16.mxu1 (!%p412_p2), %vm1986_vm1, %v1985_v8  ;;  %v1901_v10 = vld [vmem:[%s2362_s2 + $0x10] sm:$0xff] (!%p412_p2)   ;;  %v1902_v11 = vld [vmem:[%s2362_s2 + $0x18] sm:$0xff] (!%p412_p2)   ;;  %v575_v12 = vld [vmem:[%s2364_s4] sm:$0xff] (!%p412_p2)  ;;  %v1987_v14 = vmov (!%p412_p2), 0.0|0.0   ;;  %vm585_vm2 = vcmask (!%p412_p2), 654336  }
   0x7   : > { %1748 = vmatpush3.bf16.msra.mxu1 (!%p412_p2), %v1899_v7  ;;  %1802 = vmatprep.mubr.msk.f32.mxu0 (!%p412_p2), %vm1986_vm1, %v1985_v8  ;;  %v576_v13 = vld [vmem:[%s2364_s4 + $0x8] sm:$0xff] (!%p412_p2)  ;;  %v577_v16 = vld [vmem:[%s2364_s4 + $0x10] sm:$0xff] (!%p412_p2)  ;;  %v578_v17 = vld [vmem:[%s2364_s4 + $0x18] sm:$0xff] (!%p412_p2)  ;;  %v2142_v29 = vshrl.u32 (!%p412_p2), %v481_v27, 7  ;;  %s1988_s16 = smov (!%p412_p2), 104   ;;  %s1989_s17 = smov (!%p412_p2), 120  }
   0x8   : > { %1749 = vmatprep.subr.bf16.mxu1 (!%p412_p2), %v1985_v8  ;;  %v1842_v15 = vpack.c.bf16 (!%p412_p2), %v576_v13, %v575_v12  ;;  %1856 = vmatprep.subr.bf16.mxu0 (!%p412_p2), %v1987_v14  ;;  %v1845_v18 = vpack.c.bf16 (!%p412_p2), %v578_v17, %v577_v16  ;;  %v579_v19 = vld [vmem:[%s2364_s4 + $0x20] sm:$0xff] (!%p412_p2)  ;;  %v580_v20 = vld [vmem:[%s2364_s4 + $0x28] sm:$0xff] (!%p412_p2)  ;;  %v581_v22 = vld [vmem:[%s2364_s4 + $0x30] sm:$0xff] (!%p412_p2)  ;;  %s1991_s19 = smov (!%p412_p2), 64   ;;  %s1992_s20 = smov (!%p412_p2), 56   ;;  %vm765_vm3 = vcmask (!%p412_p2), 1043456  }
   0x9   : > { %v1848_v21 = vpack.c.bf16 (!%p412_p2), %v580_v20, %v579_v19  ;;  %v582_v23 = vld [vmem:[%s2364_s4 + $0x38] sm:$0xff] (!%p412_p2)  ;;  %v483_v30 = vsub.s32 (!%p412_p2), 0, %v2142_v29  ;;  %v2148_v31 = vld [vmem:[%s2361_s1] sm:$0xf] (!%p412_p2)  ;;  %v488_v32 = vsub.s32 (!%p412_p2), 1, %v2142_v29  ;;  %v584_v41 = vld [vmem:[%s2364_s4 + $0x48] sm:$0xff] (!%p412_p2) }
   0xa   : > { %1858 = vmatpush3.bf16.msra.mxu0 (!%p412_p2), %v1842_v15  ;;  %v1851_v24 = vpack.c.bf16 (!%p412_p2), %v582_v23, %v581_v22  ;;  %v583_v40 = vld [vmem:[%s2364_s4 + $0x40] sm:$0xff] (!%p412_p2)  ;;  %vm774_vm4 = vcmask (!%p412_p2), 64512   ;;  %s1993_s21 = smov (!%p412_p2), 96   ;;  %v754_v20 = vld [vmem:[%s2367_s7 + $0x8] sm:$0xff] (!%p412_p2)  ;;  %s1996_s26 = smov (!%p412_p2), 16   ;;  %vm1155_vm5 = vcmask (!%p412_p2), 130048  }
   0xb   : > { %1750 = vmatpush3.bf16.msra.mxu1 (!%p412_p2), %v1900_v9  ;;  %1859 = vmatprep.subr.bf16.mxu0 (!%p412_p2), %v1987_v14  ;;  %v484_v33 = vrot.slane (!%p412_p2), %v2148_v31, %v483_v30  ;;  %v489_v36 = vrot.slane (!%p412_p2), %v2148_v31, %v488_v32  ;;  %v1854_v42 = vpack.c.bf16 (!%p412_p2), %v584_v41, %v583_v40  ;;  %v1629_v43 = vld [vmem:[%s2363_s3] ss:$0 sm:$0xff] (!%p412_p2)  ;;  %s1997_s27 = smov (!%p412_p2), 24   ;;  %vm1157_vm6 = vcmask (!%p412_p2), 195584  }
   0xc   : > { %1751 = vmatprep.subr.bf16.mxu1 (!%p412_p2), %v1985_v8  ;;  %v1637_v57 = vld [vmem:[%s2365_s5] ss:$0 sm:$0xff] (!%p412_p2)  ;;  %vm1159_vm7 = vcmask (!%p412_p2), 261120   ;;  %vm1161_vm8 = vcmask (!%p412_p2), 326656   ;;  %vm1163_vm9 = vcmask (!%p412_p2), 392192   ;;  %vm1165_vm10 = vcmask (!%p412_p2), 457728  }
   0xd   : > { %s2376_s30 = smov (!%p455_p3, %s1622_s30), 1  ;;  %v1638_v59 = vld [vmem:[%s2366_s6] ss:$0 sm:$0xff] }
   0xe   : > { %s1627_s15 = sshll.u32 %s2376_s30, 3  ;;  %1861 = vmatpush3.bf16.msra.mxu0 %v1845_v18 }
   0xf   : > { %s458_s18 = scalar_lea.vmem %s2360_s0, %s1627_s15  ;;  %1752 = vmatpush3.bf16.msra.mxu1 %v1901_v10  ;;  %1862 = vmatprep.subr.bf16.mxu0 %v1987_v14  ;;  %s462_s23 = scalar_lea.vmem %s2374_s14, %s1627_s15 }
  0x10   : > { %v2092_v0 = vld [vmem:[%s458_s18] sm:$0xff]  ;;  %1753 = vmatprep.subr.bf16.mxu1 %v1985_v8  ;;  %s1990_s18 = smov 112  }
  0x11   : > { %v467_v1 = vsel %vm466_vm0, %v2092_v0, 0.0 }
  0x12   : > { %468 = vadd.xlane.f32.xlu0 %v467_v1  ;;  %1864 = vmatpush3.bf16.msra.mxu0 %v1848_v21 }
  0x13   : > { %1754 = vmatpush3.bf16.msra.mxu1 %v1902_v11  ;;  %1865 = vmatprep.subr.bf16.mxu0 %v1987_v14 }
  0x14   : > { %1841 = vmatprep.subr.bf16.mxu1 %v1987_v14 }
  0x16   : > { %1867 = vmatpush3.bf16.msra.mxu0 %v1851_v24 }
  0x17   : > { %1868 = vmatprep.subr.bf16.mxu0 %v1987_v14 }
  0x1a   : > { %1870 = vmatpush3.bf16.msra.mxu0 %v1854_v42 }
  0x9f   : > { %v469_v2 = vpop.xlane.xlu0 %468 }
  0xa0   : > { %v471_v3 = vmul.f32 0.015625, %v469_v2 }
  0xa2   : > { %v472_v4 = vsub.f32 %v2092_v0, %v471_v3 }
  0xa4   : > { %v473_v5 = vmul.f32 %v472_v4, %v472_v4 }
  0xa6   : > { %v474_v6 = vsel %vm466_vm0, %v473_v5, 0.0 }
  0xa7   : > { %475 = vadd.xlane.f32.xlu0 %v474_v6 }
 0x134   : > { %v476_v25 = vpop.xlane.xlu0 %475 }
 0x135   : > { %v477_v26 = vmul.f32 0.015625, %v476_v25  ;;  %v756_v25 = vld [vmem:[%s2367_s7 + $0x18] sm:$0xff] }
 0x137   : > { %v478_v28 = vadd.f32 1e-05, %v477_v26 }
 0x139   : > { %1935 = vrsqrt.f32 %v478_v28 }
 0x143   : > { %v1936_v34 = vpop.eup %1935 }
 0x144   : > { %v480_v35 = vmul.f32 %v1936_v34, %v472_v4 }
 0x146   : > { %v485_v37 = vmul.f32 %v484_v33, %v480_v35 }
 0x148   : > { %v490_v38 = vadd.f32 %v489_v36, %v485_v37 }
 0x14a   : > { %v491_v39 = vpack.c.bf16 %v490_v38, %v490_v38 }
 0x14c   : > { %1756 = vmatmul.mubr.msk.bf16.vlgmr.msra.gmra.mrb[0].mxu1 %vm466_vm0, %v491_v39 }
 0x14d   : > { %1843 = vmatpush3.bf16.msra.mxu1 %v1842_v15  ;;  %1779 = vmatprep.mubr.msk.f32.mxu1 %vm1986_vm1, %v1985_v8  ;;  %v753_v15 = vld [vmem:[%s2367_s7] sm:$0xff] }
 0x14e   : > { %1844 = vmatprep.subr.bf16.mxu1 %v1987_v14 }
 0x151   : > { %1846 = vmatpush3.bf16.msra.mxu1 %v1845_v18 }
 0x152   : > { %1847 = vmatprep.subr.bf16.mxu1 %v1987_v14 }
 0x155   : > { %1849 = vmatpush3.bf16.msra.mxu1 %v1848_v21  ;;  %v755_v21 = vld [vmem:[%s2367_s7 + $0x10] sm:$0xff] }
 0x156   : > { %1850 = vmatprep.subr.bf16.mxu1 %v1987_v14 }
 0x159   : > { %1852 = vmatpush3.bf16.msra.mxu1 %v1851_v24 }
 0x15a   : > { %1853 = vmatprep.subr.bf16.mxu1 %v1987_v14 }
 0x15d   : > { %1855 = vmatpush3.bf16.msra.mxu1 %v1854_v42 }
 0x21f   : > { %v568_v44 = vpop.f32.mrb[0].mxu1 }
 0x220   : > { %v2169_v45 = vadd.f32 %v1629_v43, %v568_v44  ;;  %v1757_v46 = vpop.f32.mrb[1].mxu1 }
 0x221   : > { %v571_v47 = vpop.f32.mrb[2].mxu1 }
 0x222   : > { %v1758_v48 = vpop.f32.mrb[3].mxu1  ;;  %1780 = vmatmul.mubr.msk.f32.vlgmr.msra.gmra.mrb[4].mxu1 %vm585_vm2, %v2169_v45 }
 0x2f5   : > { %v655_v49 = vpop.f32.mrb[4].mxu1 }
 0x2f6   : > { %v659_v50 = vsub.f32 %v2169_v45, %v655_v49  ;;  %v1781_v51 = vpop.f32.mrb[5].mxu1 }
 0x2f8   : > { %v660_v52 = vmul.f32 %v659_v50, %v659_v50 }
 0x2fa   : > { %1803 = vmatmul.mubr.msk.f32.vlgmr.msra.gmra.mrb[0].mxu0 %vm585_vm2, %v660_v52 }
 0x3cd   : > { %v730_v53 = vpop.f32.mrb[0].mxu0 }
 0x3ce   : > { %v731_v54 = vadd.f32 1e-05, %v730_v53  ;;  %v1804_v55 = vpop.f32.mrb[1].mxu0 }
 0x3d0   : > { %1937 = vrsqrt.f32 %v731_v54 }
 0x3da   : > { %v1938_v56 = vpop.eup %1937 }
 0x3db   : > { %v735_v58 = vmul.f32 %v1938_v56, %v659_v50 }
 0x3dd   : > { %v743_v60 = vmul.f32 %v1637_v57, %v735_v58 }
 0x3df   : > { %v751_v61 = vadd.f32 %v1638_v59, %v743_v60 }
 0x3e1   : > { %v752_v62 = vpack.c.bf16 %v751_v61, %v751_v61 }
 0x3e3   : > { %v758_v63 = vrot.slane %v752_v62, 4 }
 0x3e5   : > { %763 = vrot.lane.b32.xlu0 %v758_v63, %s1988_s16  ;;  %759 = vrot.lane.b32.xlu1 %v758_v63, %s1989_s17  ;;  %s1994_s17 = smov 48  }
 0x3e9   : > { %761 = vrot.lane.b32.xlu1 %v752_v62, %s1990_s18  ;;  %s1995_s18 = smov 40  }
 0x3ed   : > { %772 = vrot.lane.b32.xlu1 %v752_v62, %s1991_s19  ;;  %s1998_s19 = smov 8  }
 0x3f1   : > { %952 = vrot.lane.b32.xlu1 %v752_v62, %s1992_s20 }
 0x457   : > { %v760_v1 = vpop.permute.xlu1 %759  ;;  %v764_v3 = vpop.permute.xlu0 %763 }
 0x458   : > { %v768_v2 = vsel %vm765_vm3, %v752_v62, %v760_v1 }
 0x459   : > { %948 = vrot.lane.b32.xlu1 %v768_v2, %s1993_s21  ;;  %1807 = vmatprep.mubr.msk.bf16.mxu1 %vm774_vm4, %v768_v2 }
 0x45b   : > { %v762_v4 = vpop.permute.xlu1 %761 }
 0x45c   : > { %v771_v5 = vsel %vm765_vm3, %v762_v4, %v764_v3 }
 0x45d   : > { %950 = vrot.lane.b32.xlu1 %v771_v5, %s1993_s21  ;;  %s1999_s21 = smov 32  }
 0x45f   : > { %v773_v6 = vpop.permute.xlu1 %772 }
 0x460   : > { %v780_v7 = vsel %vm774_vm4, %v773_v6, 0  ;;  %1871 = vmatprep.subr.msk.bf16.mxu1 %vm774_vm4, %v773_v6 }
 0x461   : > { %1806 = vmatpush3.bf16.xpose.msra.mxu1 %v780_v7 }
 0x463   : > { %v953_v9 = vpop.permute.xlu1 %952 }
 0x464   : > { %v961_v10 = vsel %vm774_vm4, %v953_v9, 0  ;;  %1873 = vmatprep.subr.msk.bf16.mxu0 %vm774_vm4, %v953_v9 }
 0x465   : > { %1818 = vmatpush3.bf16.xpose.msra.mxu0 %v961_v10 }
 0x466   : > { %1829 = vmatprep.subr.bf16.mxu0 %v1985_v8 }
 0x468   : > { %1808 = vmatmul.mubr.msk.bf16.vlgmr.msra.gmra.mrb[8].mxu1 %vm774_vm4, %v771_v5 }
 0x4cb   : > { %v949_v11 = vpop.permute.xlu1 %948 }
 0x4cc   : > { %1819 = vmatprep.mubr.msk.bf16.mxu0 %vm774_vm4, %v949_v11 }
 0x4cf   : > { %v951_v12 = vpop.permute.xlu1 %950 }
 0x4d0   : > { %1820 = vmatmul.mubr.msk.bf16.vlgmr.msra.gmra.mrb[4].mxu0 %vm774_vm4, %v951_v12 }
 0x4d1   : > { %1837 = vmatprep.mubr.msk.bf16.mxu0 %vm1986_vm1, %v1985_v8 }
 0x53b   : > { %v1809_v13 = vpop.f32.mrb[8].mxu1 }
 0x53c   : > { %v816_v14 = vpop.f32.mrb[9].mxu1  ;;  %v833_v16 = vmul.f32 0.35355338, %v1809_v13 }
 0x53d   : > { %v831_v17 = vmul.f32 0.35355338, %v816_v14  ;;  %v1810_v18 = vpop.f32.mrb[10].mxu1 }
 0x53e   : > { %v819_v19 = vpop.f32.mrb[11].mxu1  ;;  %v834_v22 = vmul.f32 0.35355338, %v1810_v18  ;;  %v837_v28 = vadd.f32 %v833_v16, %v755_v21 }
 0x53f   : > { %v832_v23 = vmul.f32 0.35355338, %v819_v19  ;;  %v835_v24 = vadd.f32 %v831_v17, %v753_v15 }
 0x540   : > { %v838_v34 = vadd.f32 %v834_v22, %v756_v25  ;;  %v845_v35 = vsel %vm774_vm4, %v837_v28, -inf }
 0x541   : > { %v839_v26 = vsel %vm774_vm4, %v835_v24, -inf  ;;  %v836_v27 = vadd.f32 %v832_v23, %v754_v20 }
 0x542   : > { %840 = vmax.xlane.f32.xlu1 %v839_v26  ;;  %v848_v36 = vsel %vm774_vm4, %v838_v34, -inf }
 0x543   : > { %v842_v33 = vsel %vm774_vm4, %v836_v27, -inf }
 0x544   : > { %843 = vmax.xlane.f32.xlu0 %v842_v33 }
 0x546   : > { %846 = vmax.xlane.f32.xlu1 %v845_v35 }
 0x548   : > { %849 = vmax.xlane.f32.xlu0 %v848_v36  ;;  %v574_v36 = vpack.c.bf16 %v2169_v45, %v2169_v45 }
 0x5a3   : > { %v1821_v37 = vpop.f32.mrb[4].mxu0 }
 0x5a4   : > { %v997_v38 = vpop.f32.mrb[5].mxu0  ;;  %v1014_v39 = vmul.f32 0.35355338, %v1821_v37 }
 0x5a5   : > { %v1012_v40 = vmul.f32 0.35355338, %v997_v38  ;;  %v1822_v41 = vpop.f32.mrb[6].mxu0 }
 0x5a6   : > { %v1000_v42 = vpop.f32.mrb[7].mxu0  ;;  %v1015_v43 = vmul.f32 0.35355338, %v1822_v41  ;;  %v1018_v49 = vadd.f32 %v1014_v39, %v755_v21 }
 0x5a7   : > { %v1013_v44 = vmul.f32 0.35355338, %v1000_v42  ;;  %v1016_v46 = vadd.f32 %v1012_v40, %v753_v15 }
 0x5a8   : > { %v1019_v51 = vadd.f32 %v1015_v43, %v756_v25  ;;  %v1026_v52 = vsel %vm774_vm4, %v1018_v49, -inf }
 0x5a9   : > { %v1020_v47 = vsel %vm774_vm4, %v1016_v46, -inf  ;;  %v1017_v48 = vadd.f32 %v1013_v44, %v754_v20 }
 0x5aa   : > { %1021 = vmax.xlane.f32.xlu1 %v1020_v47  ;;  %v1029_v53 = vsel %vm774_vm4, %v1019_v51, -inf }
 0x5ab   : > { %v1023_v50 = vsel %vm774_vm4, %v1017_v48, -inf }
 0x5ac   : > { %1024 = vmax.xlane.f32.xlu0 %v1023_v50 }
 0x5ae   : > { %1027 = vmax.xlane.f32.xlu1 %v1026_v52 }
 0x5b0   : > { %1030 = vmax.xlane.f32.xlu0 %v1029_v53 }
 0x5cf   : > { %v841_v54 = vpop.xlane.xlu1 %840 }
 0x5d0   : > { %v851_v55 = vsub.f32 %v835_v24, %v841_v54 }
 0x5d1   : > { %v844_v56 = vpop.xlane.xlu0 %843 }
 0x5d2   : > { %v852_v58 = vsub.f32 %v836_v27, %v844_v56  ;;  %v855_v60 = vmul.f32 1.442695, %v851_v55 }
 0x5d3   : > { %v847_v57 = vpop.xlane.xlu1 %846 }
 0x5d4   : > { %v853_v59 = vsub.f32 %v837_v28, %v847_v57  ;;  %v857_v1 = vmul.f32 1.442695, %v852_v58 }
 0x5d5   : > { %v850_v61 = vpop.xlane.xlu0 %849 }
 0x5d6   : > { %v859_v62 = vmul.f32 1.442695, %v853_v59  ;;  %v854_v63 = vsub.f32 %v838_v34, %v850_v61 }
 0x5d8   : > { %1939 = vpow2.f32 %v859_v62  ;;  %v861_v2 = vmul.f32 1.442695, %v854_v63 }
 0x5d9   : > { %1941 = vpow2.f32 %v855_v60 }
 0x5da   : > { %1943 = vpow2.f32 %v861_v2 }
 0x5db   : > { %1945 = vpow2.f32 %v857_v1 }
 0x5e2   : > { %v1940_v3 = vpop.eup %1939 }
 0x5e3   : > { %v1942_v4 = vpop.eup %1941  ;;  %v869_v5 = vsel %vm774_vm4, %v1940_v3, 0.0 }
 0x5e4   : > { %v1944_v6 = vpop.eup %1943  ;;  %870 = vadd.xlane.f32.xlu1 %v869_v5  ;;  %v863_v10 = vsel %vm774_vm4, %v1942_v4, 0.0 }
 0x5e5   : > { %v872_v7 = vsel %vm774_vm4, %v1944_v6, 0.0  ;;  %v1946_v9 = vpop.eup %1945 }
 0x5e6   : > { %873 = vadd.xlane.f32.xlu0 %v872_v7  ;;  %v866_v11 = vsel %vm774_vm4, %v1946_v9, 0.0  ;;  %v1904_v7 = vld [vmem:[%s2368_s8 + $0x8] sm:$0xff]  }
 0x5e8   : > { %864 = vadd.xlane.f32.xlu1 %v863_v10 }
 0x5ea   : > { %867 = vadd.xlane.f32.xlu0 %v866_v11 }
 0x637   : > { %v1022_v12 = vpop.xlane.xlu1 %1021 }
 0x638   : > { %v1032_v13 = vsub.f32 %v1016_v46, %v1022_v12 }
 0x639   : > { %v1025_v14 = vpop.xlane.xlu0 %1024 }
 0x63a   : > { %v1033_v16 = vsub.f32 %v1017_v48, %v1025_v14  ;;  %v1036_v18 = vmul.f32 1.442695, %v1032_v13  ;;  %v1906_v14 = vld [vmem:[%s2368_s8 + $0x18] sm:$0xff]  }
 0x63b   : > { %v1028_v15 = vpop.xlane.xlu1 %1027 }
 0x63c   : > { %v1034_v17 = vsub.f32 %v1018_v49, %v1028_v15  ;;  %v1038_v22 = vmul.f32 1.442695, %v1033_v16 }
 0x63d   : > { %v1031_v19 = vpop.xlane.xlu0 %1030 }
 0x63e   : > { %v1040_v20 = vmul.f32 1.442695, %v1034_v17  ;;  %v1035_v21 = vsub.f32 %v1019_v51, %v1031_v19 }
 0x640   : > { %1947 = vpow2.f32 %v1040_v20  ;;  %v1042_v23 = vmul.f32 1.442695, %v1035_v21 }
 0x641   : > { %1949 = vpow2.f32 %v1036_v18 }
 0x642   : > { %1951 = vpow2.f32 %v1042_v23 }
 0x643   : > { %1953 = vpow2.f32 %v1038_v22 }
 0x64a   : > { %v1948_v24 = vpop.eup %1947 }
 0x64b   : > { %v1950_v25 = vpop.eup %1949  ;;  %v1050_v26 = vsel %vm774_vm4, %v1948_v24, 0.0 }
 0x64c   : > { %v1952_v27 = vpop.eup %1951  ;;  %1051 = vadd.xlane.f32.xlu1 %v1050_v26  ;;  %v1044_v34 = vsel %vm774_vm4, %v1950_v25, 0.0 }
 0x64d   : > { %v1053_v28 = vsel %vm774_vm4, %v1952_v27, 0.0  ;;  %v1954_v33 = vpop.eup %1953 }
 0x64e   : > { %1054 = vadd.xlane.f32.xlu0 %v1053_v28  ;;  %v1047_v35 = vsel %vm774_vm4, %v1954_v33, 0.0 }
 0x650   : > { %1045 = vadd.xlane.f32.xlu1 %v1044_v34 }
 0x652   : > { %1048 = vadd.xlane.f32.xlu0 %v1047_v35 }
 0x661   : > { %886 = vrot.lane.b32.xlu1 %v574_v36, %s1994_s17 }
 0x668   : > { %1066 = vrot.lane.b32.xlu0 %v574_v36, %s1995_s18 }
 0x671   : > { %v871_v37 = vpop.xlane.xlu1 %870 }
 0x672   : > { %1955 = vrcp.f32 %v871_v37 }
 0x673   : > { %v874_v38 = vpop.xlane.xlu0 %873 }
 0x674   : > { %1957 = vrcp.f32 %v874_v38  ;;  %v1652_v38 = vld [vmem:[%s2369_s9] ss:$0 sm:$0xff] }
 0x675   : > { %v865_v39 = vpop.xlane.xlu1 %864 }
 0x676   : > { %1959 = vrcp.f32 %v865_v39 }
 0x677   : > { %v868_v40 = vpop.xlane.xlu0 %867 }
 0x678   : > { %1961 = vrcp.f32 %v868_v40 }
 0x67c   : > { %v1956_v41 = vpop.eup %1955 }
 0x67d   : > { %v881_v43 = vmul.f32 %v1956_v41, %v1940_v3 }
 0x67e   : > { %v1958_v42 = vpop.eup %1957 }
 0x67f   : > { %v882_v44 = vmul.f32 %v1958_v42, %v1944_v6  ;;  %v1903_v6 = vld [vmem:[%s2368_s8] sm:$0xff]  }
 0x680   : > { %v1960_v46 = vpop.eup %1959  ;;  %1830 = vmatpush3.bf16.msra.mxu0 %v1903_v6 }
 0x681   : > { %v884_v45 = vpack.c.bf16 %v882_v44, %v881_v43  ;;  %v879_v48 = vmul.f32 %v1960_v46, %v1942_v4  ;;  %1831 = vmatprep.subr.bf16.mxu0 %v1985_v8 }
 0x682   : > { %v1962_v47 = vpop.eup %1961 }
 0x683   : > { %v880_v49 = vmul.f32 %v1962_v47, %v1946_v9  ;;  %v1905_v9 = vld [vmem:[%s2368_s8 + $0x10] sm:$0xff]  }
 0x684   : > { %1832 = vmatpush3.bf16.msra.mxu0 %v1904_v7 }
 0x685   : > { %v883_v50 = vpack.c.bf16 %v880_v49, %v879_v48  ;;  %1833 = vmatprep.subr.bf16.mxu0 %v1985_v8 }
 0x687   : > { %1813 = vmatprep.mubr.msk.bf16.mxu1 %vm774_vm4, %v883_v50  ;;  %v1907_v50 = vld [vmem:[%s2370_s10] ss:$8 sps:$4 sm:$0xff]  }
 0x688   : > { %1834 = vmatpush3.bf16.msra.mxu0 %v1905_v9 }
 0x689   : > { %1835 = vmatprep.subr.bf16.mxu0 %v1985_v8 }
 0x68c   : > { %1836 = vmatpush3.bf16.msra.mxu0 %v1906_v14  ;;  %v1925_v14 = vld [vmem:[%s2372_s12 + $0x58] sm:$0xff]  }
 0x6d9   : > { %v1052_v51 = vpop.xlane.xlu1 %1051 }
 0x6db   : > { %v1055_v52 = vpop.xlane.xlu0 %1054 }
 0x6dc   : > { %1963 = vrcp.f32 %v1055_v52  ;;  %v1910_v52 = vld [vmem:[%s2370_s10 + $0x10] ss:$8 sps:$4 sm:$0xff]  }
 0x6dd   : > { %v1046_v53 = vpop.xlane.xlu1 %1045 }
 0x6de   : > { %1965 = vrcp.f32 %v1046_v53  ;;  %v1915_v53 = vld [vmem:[%s2370_s10 + $0x24] ss:$8 sps:$4 sm:$0xff]  }
 0x6df   : > { %1967 = vrcp.f32 %v1052_v51  ;;  %v1049_v54 = vpop.xlane.xlu0 %1048  ;;  %v1912_v51 = vld [vmem:[%s2370_s10 + $0x14] ss:$8 sps:$4 sm:$0xff]  }
 0x6e0   : > { %1969 = vrcp.f32 %v1049_v54  ;;  %v1913_v54 = vld [vmem:[%s2370_s10 + $0x20] ss:$8 sps:$4 sm:$0xff]  }
 0x6e1   : > { %v887_v55 = vpop.permute.xlu1 %886 }
 0x6e2   : > { %v895_v56 = vsel %vm765_vm3, %v887_v55, 0  ;;  %1872 = vmatprep.subr.msk.bf16.mxu1 %vm765_vm3, %v887_v55  ;;  %v1916_v55 = vld [vmem:[%s2370_s10 + $0x30] ss:$8 sps:$4 sm:$0xff]  }
 0x6e3   : > { %1812 = vmatpush3.bf16.msra.mxu1 %v895_v56  ;;  %v1067_v57 = vpop.permute.xlu0 %1066  ;;  %v1918_v56 = vld [vmem:[%s2370_s10 + $0x34] ss:$8 sps:$4 sm:$0xff]  }
 0x6e4   : > { %1874 = vmatprep.subr.msk.bf16.mxu1 %vm765_vm3, %v1067_v57  ;;  %v1075_v58 = vsel %vm765_vm3, %v1067_v57, 0  ;;  %v2000_v57 = vmov 0  }
 0x6e6   : > { %1814 = vmatmul.mubr.msk.bf16.vlgmr.msra.gmra.mrb[12].mxu1 %vm774_vm4, %v884_v45  ;;  %v1964_v59 = vpop.eup %1963 }
 0x6e7   : > { %1824 = vmatpush3.bf16.msra.mxu1 %v1075_v58  ;;  %v1063_v63 = vmul.f32 %v1964_v59, %v1952_v27  ;;  %v1919_v58 = vld [vmem:[%s2372_s12 + $0x40] sm:$0xff]  }
 0x6e8   : > { %v1966_v60 = vpop.eup %1965  ;;  %v1920_v59 = vld [vmem:[%s2372_s12] sm:$0xff]   ;;  %1725 = vmatprep.subr.bf16.mxu0 %v1919_v58 }
 0x6e9   : > { %v1968_v61 = vpop.eup %1967  ;;  %v1060_v1 = vmul.f32 %v1966_v60, %v1950_v25  ;;  %v1921_v60 = vld [vmem:[%s2372_s12 + $0x48] sm:$0xff]  }
 0x6ea   : > { %v1970_v62 = vpop.eup %1969  ;;  %v1062_v3 = vmul.f32 %v1968_v61, %v1948_v24  ;;  %v1922_v61 = vld [vmem:[%s2372_s12 + $0x8] sm:$0xff]  }
 0x6eb   : > { %v1061_v2 = vmul.f32 %v1970_v62, %v1954_v33 }
 0x6ec   : > { %v1065_v5 = vpack.c.bf16 %v1063_v63, %v1062_v3  ;;  %v1272_v3 = vsub.s32 3, %v2142_v29 }
 0x6ed   : > { %v1064_v4 = vpack.c.bf16 %v1061_v2, %v1060_v1  ;;  %v1267_v2 = vsub.s32 2, %v2142_v29 }
 0x6ee   : > { %v1273_v7 = vrot.slane %v2148_v31, %v1272_v3 }
 0x6ef   : > { %1825 = vmatprep.mubr.msk.bf16.mxu1 %vm774_vm4, %v1064_v4  ;;  %v1268_v4 = vrot.slane %v2148_v31, %v1267_v2  ;;  %v1926_v31 = vld [vmem:[%s2372_s12 + $0x18] sm:$0xff]  }
 0x6f0   : > { %1826 = vmatmul.mubr.msk.bf16.vlgmr.msra.gmra.mrb[16].mxu1 %vm774_vm4, %v1065_v5 }
 0x6f1   : > { %1371 = vmatprep.mubr.bf16.mxu1 %v2000_v57 }
 0x7b9   : > { %v1815_v10 = vpop.f32.mrb[12].mxu1 }
 0x7ba   : > { %1131 = vrot.lane.b32.xlu1 %v1815_v10, %s1996_s26  ;;  %v931_v11 = vpop.f32.mrb[13].mxu1 }
 0x7bb   : > { %v1816_v12 = vpop.f32.mrb[14].mxu1 }
 0x7bc   : > { %1135 = vrot.lane.b32.xlu0 %v1816_v12, %s1997_s27  ;;  %v934_v13 = vpop.f32.mrb[15].mxu1  ;;  %v1923_v12 = vld [vmem:[%s2372_s12 + $0x50] sm:$0xff]  }
 0x7be   : > { %1127 = vrot.lane.b32.xlu1 %v934_v13, %s1998_s19  ;;  %v1924_v13 = vld [vmem:[%s2372_s12 + $0x10] sm:$0xff]  }
 0x7c3   : > { %v1827_v15 = vpop.f32.mrb[16].mxu1 }
 0x7c4   : > { %v1111_v16 = vpop.f32.mrb[17].mxu1 }
 0x7c5   : > { %1139 = vrot.lane.b32.xlu1 %v1111_v16, %s1999_s21  ;;  %v1828_v17 = vpop.f32.mrb[18].mxu1  ;;  %v1928_v16 = vld [vmem:[%s2372_s12 + $0x20] sm:$0xff]  }
 0x7c6   : > { %v1114_v18 = vpop.f32.mrb[19].mxu1 }
 0x7c7   : > { %1143 = vrot.lane.b32.xlu0 %v1114_v18, %s1995_s18  ;;  %v1930_v18 = vld [vmem:[%s2372_s12 + $0x28] sm:$0xff]  }
 0x7c9   : > { %1147 = vrot.lane.b32.xlu1 %v1827_v15, %s1994_s17  ;;  %v1927_v15 = vld [vmem:[%s2372_s12 + $0x60] sm:$0xff]  }
 0x7cb   : > { %1151 = vrot.lane.b32.xlu0 %v1828_v17, %s1992_s20  ;;  %v1929_v17 = vld [vmem:[%s2372_s12 + $0x68] sm:$0xff]  }
 0x82c   : > { %v1132_v8 = vpop.permute.xlu1 %1131 }
 0x82e   : > { %v1136_v22 = vpop.permute.xlu0 %1135 }
 0x830   : > { %v1128_v19 = vpop.permute.xlu1 %1127 }
 0x831   : > { %v1154_v20 = vsel %vm774_vm4, %v931_v11, %v1128_v19  ;;  %v1932_v19 = vld [vmem:[%s2372_s12 + $0x30] sm:$0xff]  }
 0x832   : > { %v1156_v21 = vsel %vm1155_vm5, %v1154_v20, %v1132_v8  ;;  %v1931_v8 = vld [vmem:[%s2372_s12 + $0x70] sm:$0xff]   ;;  %v1933_v20 = vld [vmem:[%s2372_s12 + $0x78] sm:$0xff]  }
 0x833   : > { %v1158_v24 = vsel %vm1157_vm6, %v1156_v21, %v1136_v22  ;;  %v1934_v21 = vld [vmem:[%s2372_s12 + $0x38] sm:$0xff]   ;;  %v1284_v22 = vld [vmem:[%s2371_s11] sm:$0x3] }
 0x837   : > { %v1140_v23 = vpop.permute.xlu1 %1139 }
 0x838   : > { %v1160_v25 = vsel %vm1159_vm7, %v1158_v24, %v1140_v23  ;;  %v1289_v23 = vrot.slane %v1284_v22, %v483_v30  ;;  %v1293_v24 = vrot.slane %v1284_v22, %v488_v32 }
 0x839   : > { %v1144_v26 = vpop.permute.xlu0 %1143 }
 0x83a   : > { %v1162_v27 = vsel %vm1161_vm8, %v1160_v25, %v1144_v26 }
 0x83b   : > { %v1148_v28 = vpop.permute.xlu1 %1147 }
 0x83c   : > { %v1164_v33 = vsel %vm1163_vm9, %v1162_v27, %v1148_v28 }
 0x83d   : > { %v1152_v34 = vpop.permute.xlu0 %1151 }
 0x83e   : > { %v1166_v35 = vsel %vm1165_vm10, %v1164_v33, %v1152_v34 }
 0x83f   : > { %v1167_v36 = vpack.c.bf16 %v1166_v35, %v1166_v35 }
 0x841   : > { %1838 = vmatmul.mubr.msk.bf16.vlgmr.msra.gmra.mrb[8].mxu0 %vm466_vm0, %v1167_v36 }
 0x842   : > { %1726 = vmatpush3.bf16.msra.mxu0 %v1920_v59 }
 0x843   : > { %1727 = vmatprep.subr.bf16.mxu0 %v1921_v60 }
 0x846   : > { %1728 = vmatpush3.bf16.msra.mxu0 %v1922_v61 }
 0x847   : > { %1729 = vmatprep.subr.bf16.mxu0 %v1923_v12 }
 0x84a   : > { %1730 = vmatpush3.bf16.msra.mxu0 %v1924_v13 }
 0x84b   : > { %1731 = vmatprep.subr.bf16.mxu0 %v1925_v14 }
 0x84e   : > { %1732 = vmatpush3.bf16.msra.mxu0 %v1926_v31 }
 0x84f   : > { %1733 = vmatprep.subr.bf16.mxu0 %v1927_v15 }
 0x852   : > { %1734 = vmatpush3.bf16.msra.mxu0 %v1928_v16 }
 0x853   : > { %1735 = vmatprep.subr.bf16.mxu0 %v1929_v17 }
 0x856   : > { %1736 = vmatpush3.bf16.msra.mxu0 %v1930_v18 }
 0x857   : > { %1737 = vmatprep.subr.bf16.mxu0 %v1931_v8 }
 0x85a   : > { %1738 = vmatpush3.bf16.msra.mxu0 %v1932_v19 }
 0x85b   : > { %1739 = vmatprep.subr.bf16.mxu0 %v1933_v20 }
 0x85e   : > { %1740 = vmatpush3.bf16.msra.mxu0 %v1934_v21 }
 0x914   : > { %v1237_v37 = vpop.f32.mrb[8].mxu0 }
 0x915   : > { %v1243_v39 = vadd.f32 %v1237_v37, %v2092_v0  ;;  %v1839_v40 = vpop.f32.mrb[9].mxu0  ;;  %v1909_v0 = vld [vmem:[%s2370_s10 + $0x4] ss:$8 sps:$4 sm:$0xff]  }
 0x916   : > { %v1240_v41 = vpop.f32.mrb[10].mxu0  ;;  %1339 = vmatprep.subr.bf16.mxu1 %v1909_v0 }
 0x917   : > { %v2257_v42 = vadd.f32 %v1652_v38, %v1243_v39  ;;  %v1840_v43 = vpop.f32.mrb[11].mxu0  ;;  %1340 = vmatpush1.bf16.msra.mxu1 %v1907_v50 }
 0x918   : > { %1341 = vmatprep.subr.bf16.mxu1 %v1912_v51 }
 0x919   : > { %v1252_v44 = vsel %vm466_vm0, %v2257_v42, 0.0 }
 0x91a   : > { %1253 = vadd.xlane.f32.xlu1 %v1252_v44 }
 0x91b   : > { %1342 = vmatpush1.bf16.msra.mxu1 %v1910_v52 }
 0x91c   : > { %1343 = vmatprep.subr.bf16.mxu1 %v1915_v53 }
 0x91f   : > { %1344 = vmatpush1.bf16.msra.mxu1 %v1913_v54 }
 0x920   : > { %1345 = vmatprep.subr.bf16.mxu1 %v1918_v56 }
 0x923   : > { %1346 = vmatpush1.bf16.msra.mxu1 %v1916_v55 }
 0x9a7   : > { %v1254_v46 = vpop.xlane.xlu1 %1253 }
 0x9a8   : > { %v1255_v45 = vmul.f32 0.015625, %v1254_v46 }
 0x9aa   : > { %v1256_v47 = vsub.f32 %v2257_v42, %v1255_v45  ;;  %v1662_v45 = vld [vmem:[%s2373_s13] ss:$0 sm:$0xff] }
 0x9ac   : > { %v1257_v48 = vmul.f32 %v1256_v47, %v1256_v47 }
 0x9ae   : > { %v1258_v49 = vsel %vm466_vm0, %v1257_v48, 0.0 }
 0x9af   : > { %1259 = vadd.xlane.f32.xlu0 %v1258_v49 }
 0xa3c   : > { %v1260_v62 = vpop.xlane.xlu0 %1259 }
 0xa3d   : > { %v1261_v63 = vmul.f32 0.015625, %v1260_v62 }
 0xa3f   : > { %v1262_v1 = vadd.f32 1e-05, %v1261_v63 }
 0xa41   : > { %1971 = vrsqrt.f32 %v1262_v1 }
 0xa4b   : > { %v1972_v5 = vpop.eup %1971 }
 0xa4c   : > { %v1264_v6 = vmul.f32 %v1972_v5, %v1256_v47 }
 0xa4e   : > { %v1269_v9 = vmul.f32 %v1268_v4, %v1264_v6 }
 0xa50   : > { %v1274_v10 = vadd.f32 %v1273_v7, %v1269_v9 }
 0xa52   : > { %v1275_v11 = vpack.c.bf16 %v1274_v10, %v1274_v10 }
 0xa54   : > { %1661 = vmatmul.mubr.msk.bf16.vlgmr.msra.gmra.mrb[20].mxu1 %vm466_vm0, %v1275_v11 }
 0xb27   : > { %v1373_v25 = vpop.f32.mrb[20].mxu1 }
 0xb28   : > { %v1374_v26 = vadd.f32 %v1373_v25, %v1289_v23  ;;  %v1375_v27 = vpop.f32.mrb[21].mxu1 }
 0xb29   : > { %v1376_v28 = vadd.f32 %v1375_v27, %v1293_v24  ;;  %v1377_v33 = vpop.f32.mrb[22].mxu1 }
 0xb2a   : > { %v1382_v34 = vmul.f32 0.70710677, %v1374_v26  ;;  %v1378_v35 = vpop.f32.mrb[23].mxu1  ;;  %v1380_v39 = vmul.f32 0.5, %v1374_v26 }
 0xb2b   : > { %v1383_v36 = vmul.f32 0.70710677, %v1376_v28  ;;  %v1381_v41 = vmul.f32 0.5, %v1376_v28 }
 0xb2c   : > { %1973 = verf.f32 %v1382_v34 }
 0xb2d   : > { %1975 = verf.f32 %v1383_v36 }
 0xb36   : > { %v1974_v37 = vpop.eup %1973 }
 0xb37   : > { %v1976_v38 = vpop.eup %1975  ;;  %v1386_v40 = vadd.f32 1.0, %v1974_v37 }
 0xb38   : > { %v1387_v30 = vadd.f32 1.0, %v1976_v38 }
 0xb39   : > { %v1388_v43 = vmul.f32 %v1386_v40, %v1380_v39 }
 0xb3a   : > { %v1389_v29 = vmul.f32 %v1387_v30, %v1381_v41 }
 0xb3b   : > { %v1390_v44 = vpack.c.bf16 %v1388_v43, %v1388_v43 }
 0xb3c   : > { %v1391_v32 = vpack.c.bf16 %v1389_v29, %v1389_v29 }
 0xb3e   : > { %1559 = vmatprep.mubr.bf16.mxu0 %v1391_v32 }
 0xb3f   : > { %1560 = vmatmul.mubr.bf16.vlgmr.msra.gmra.mrb[12].mxu0 %v1390_v44 }
 0xc12   : > { %v1741_v46 = vpop.f32.mrb[12].mxu0 }
 0xc13   : > { %v1742_v47 = vpop.f32.mrb[13].mxu0 }
 0xc14   : > { %v1743_v48 = vadd.f32 %v1742_v47, %v1741_v46  ;;  %v1744_v49 = vpop.f32.mrb[14].mxu0 }
 0xc15   : > { %v1745_v0 = vpop.f32.mrb[15].mxu0 }
 0xc16   : > { %v1562_v50 = vadd.f32 %v1743_v48, %v1662_v45 }
 0xc18   : > { %v1567_v51 = vadd.f32 %v1562_v50, %v2257_v42 }
 0xc1a   : > { %1568 = vst.msk [vmem:[%s462_s23] sm:$0xff] %vm466_vm0, %v1567_v51 }
 0xc1b PF: > { %s24_s29 = sadd.s32 1, %s1983_s29  }
 0xc1c   : > { %p21_p4 = scmp.ge.s32.totalorder %s24_s29, 4  }
 0xc1e   :  { %23 = sbr.rel (!%p21_p4) target bundleno = 1 (0x1), region = 106 }

</bundles_post_ra>
